<compile_context>
chip_gen: v6e
topology: v6e:2x2x1
jax: 0.10.0
libtpu: 0.0.40
codegen_flags: <defaults>
</compile_context>

<pallas_src>
import numpy as np
import jax
import jax.numpy as jnp
from jax import lax
from jax.experimental import pallas as pl
from jax.experimental.pallas import tpu as pltpu


# ----------------------------- Pallas kernel ---------------------------------
def _bidir_lstm_layer_kernel(lens_ref, x_ref, wih_ref, bias_ref, whh_ref,
                             y_ref, h_ref, c_ref, gx_ref):
    """One LSTM layer, both directions.  grid = (2 directions, T_pad // Tc).

    lens_ref: (B, 1)  int32 resident (constant index map) -> no per-step DMA.
    x_ref   : (E, Tc, B, Din) raw layer-input chunk (E=1 for layer 0, E=2 fwd/bwd slabs after).
    wih_ref : (E, Din, 4H) input-projection weights (resident per direction).
    bias_ref: (1, 4H)      b_ih + b_hh (resident per direction).
    whh_ref : (H, 4H)      recurrent weights (resident per direction).
    y_ref   : (Tc, B, H)   per-chunk output slab (written into (2, T_pad, B, H)).
    h_ref, c_ref: (B, H)   resident carry / final-state accumulators.
    gx_ref  : (Tc*B, 4H)   VMEM scratch: fused gate pre-activations for this chunk.
    Gate order along the 4H axis is [i, f, o, g] (repacked by the wrapper).
    """
    d = pl.program_id(0)          # direction: 0 = forward, 1 = backward
    tb = pl.program_id(1)         # time-chunk step (processing order)
    nT = pl.num_programs(1)
    E, Tc, B, Din = x_ref.shape
    H = whh_ref.shape[0]

    @pl.when(tb == 0)
    def _():                      # start of each direction: zero the carry
        h_ref[...] = jnp.zeros_like(h_ref)
        c_ref[...] = jnp.zeros_like(c_ref)

    # ---- fused input projection for the whole chunk: one big MXU matmul per source slab ----
    gx = jnp.dot(x_ref[0].reshape(Tc * B, Din), wih_ref[0],
                 preferred_element_type=jnp.float32)
    for e in range(1, E):
        gx = gx + jnp.dot(x_ref[e].reshape(Tc * B, Din), wih_ref[e],
                          preferred_element_type=jnp.float32)
    gx_ref[...] = gx + bias_ref[...]

    # ---- serial recurrence over the chunk (small (B,H)@(H,4H) MXU dot per step) ----
    lens = lens_ref[...]                              # (B, 1) int32
    w_hh = whh_ref[...]                               # (H, 4H), loop-invariant (MXU RHS reuse)
    cb = (1 - d) * tb + d * (nT - 1 - tb)             # absolute time-chunk index for this step
    t_base = cb * Tc

    def step(s, carry):
        h_prev, c_prev = carry
        # row inside the chunk, in processing order (reversed for the backward direction)
        r = (1 - d) * s + d * (Tc - 1 - s)
        t_abs = t_base + r
        row = pl.multiple_of(r * B, 8)                # B is padded to a multiple of 8
        gates = gx_ref[pl.ds(row, B), :] + jnp.dot(h_prev, w_hh,
                                                   preferred_element_type=jnp.float32)
        # repacked gate order [i, f, o | g]: one contiguous sigmoid + one tanh
        sg = jax.nn.sigmoid(gates[:, :3 * H])
        i_g = sg[:, 0 * H:1 * H]
        f_g = sg[:, 1 * H:2 * H]
        o_g = sg[:, 2 * H:3 * H]
        g_g = jnp.tanh(gates[:, 3 * H:4 * H])

        c_new = f_g * c_prev + i_g * g_g
        h_new = o_g * jnp.tanh(c_new)

        valid = lens > t_abs                          # (B, 1) bool, broadcasts over H
        y_ref[r] = jnp.where(valid, h_new, 0.0)       # pad_packed -> zeros past seq end
        return (jnp.where(valid, h_new, h_prev),      # freeze carry past seq end
                jnp.where(valid, c_new, c_prev))

    # cap the unroll: fully unrolling long chunks keeps too many (B,4H) gate tensors live -> spills
    unroll = True if Tc <= 8 else 8
    h_fin, c_fin = lax.fori_loop(0, Tc, step, (h_ref[...], c_ref[...]), unroll=unroll)
    h_ref[...] = h_fin
    c_ref[...] = c_fin


def bidir_lstm_layer(x_all, w_ih, w_hh, bias, lens_i32, *, time_chunk):
    """One bidirectional LSTM layer with the input projection fused into the kernel.

    x_all   : (E, T_pad, B, Din) f32  layer input (E=1 raw input / E=2 prev-layer fwd+bwd slabs)
    w_ih    : (2, E, Din, 4H) f32     gate order [i,f,o,g]
    w_hh    : (2, H, 4H) f32
    bias    : (2, 1, 4H) f32
    lens_i32: (B, 1) int32
    returns y (2, T_pad, B, H), h_n (2, B, H), c_n (2, B, H)
    """
    E, T_pad, B, Din = x_all.shape
    H = w_hh.shape[1]
    G4 = 4 * H
    Tc = time_chunk
    nT = T_pad // Tc

    def chunk_idx(d, tb):
        # forward walks chunks 0..nT-1, backward walks nT-1..0
        return (1 - d) * tb + d * (nT - 1 - tb)

    # Explicit scoped-VMEM budget: double-buffered pipeline blocks + resident weights + scratch.
    item = 4
    vmem_bytes = item * (2 * E * Tc * B * Din      # x chunk (double buffered)
                         + 2 * Tc * B * H          # y chunk (double buffered)
                         + 2 * E * Din * G4        # W_ih
                         + 2 * H * G4              # W_hh
                         + 2 * G4                  # bias
                         + Tc * B * G4             # gx scratch
                         + 4 * B * H + 2 * B)      # h/c accumulators + lens
    vmem_limit = int(min(64 * 2**20, max(16 * 2**20, 2 * vmem_bytes + (1 << 20))))

    cost = pl.CostEstimate(
        flops=2 * 2 * T_pad * B * G4 * (E * Din + H),
        transcendentals=2 * T_pad * B * 5 * H,
        bytes_accessed=item * (2 * E * T_pad * B * Din + 2 * T_pad * B * H
                               + 2 * (E * Din + H + 1) * G4 + 4 * B * H + B))

    y, h_n, c_n = pl.pallas_call(
        _bidir_lstm_layer_kernel,
        out_shape=(jax.ShapeDtypeStruct((2, T_pad, B, H), jnp.float32),
                   jax.ShapeDtypeStruct((2, B, H), jnp.float32),
                   jax.ShapeDtypeStruct((2, B, H), jnp.float32)),
        grid_spec=pltpu.PrefetchScalarGridSpec(
            num_scalar_prefetch=0,
            grid=(2, nT),                                   # (direction, time-chunk)
            in_specs=[
                pl.BlockSpec((B, 1), lambda d, tb: (0, 0)),                    # lens (resident)
                pl.BlockSpec((E, Tc, B, Din),
                             lambda d, tb: (0, chunk_idx(d, tb), 0, 0)),       # raw input chunk
                pl.BlockSpec((None, E, Din, G4), lambda d, tb: (d, 0, 0, 0)),  # W_ih (resident)
                pl.BlockSpec((None, 1, G4), lambda d, tb: (d, 0, 0)),          # bias (resident)
                pl.BlockSpec((None, H, G4), lambda d, tb: (d, 0, 0)),          # W_hh (resident)
            ],
            out_specs=(
                pl.BlockSpec((None, Tc, B, H),
                             lambda d, tb: (d, chunk_idx(d, tb), 0, 0)),       # y chunk
                pl.BlockSpec((None, B, H), lambda d, tb: (d, 0, 0)),           # final h (carry)
                pl.BlockSpec((None, B, H), lambda d, tb: (d, 0, 0)),           # final c (carry)
            ),
            scratch_shapes=[pltpu.VMEM((Tc * B, G4), jnp.float32)],            # fused gx chunk
        ),
        compiler_params=pltpu.CompilerParams(
            # direction axis is independent -> "parallel" (lets v7x shard fwd/bwd across its two
            # TensorCores); time is the sequential carry axis -> "arbitrary" (last grid axis).
            dimension_semantics=("parallel", "arbitrary"),
            vmem_limit_bytes=vmem_limit),
        cost_estimate=cost,
    )(lens_i32, x_all, w_ih, bias, w_hh)
    return y, h_n, c_n


# ---------------------------- parameters & glue -------------------------------
def init_lstm_params(key, input_size, hidden_size, num_layers, bidirectional=True):
    """Deterministic init mimicking nn.LSTM's U(-1/sqrt(H), 1/sqrt(H)). Weights stored
    pre-transposed (PyTorch [i|f|g|o] gate order) and stacked over the 2 directions."""
    dirs = 2 if bidirectional else 1
    bound = 1.0 / np.sqrt(hidden_size)
    params = []
    for layer in range(num_layers):
        in_dim = input_size if layer == 0 else hidden_size * dirs
        w_ih_t, w_hh_t, bias = [], [], []
        for _d in range(dirs):
            key, k1, k2, k3, k4 = jax.random.split(key, 5)
            w_ih = jax.random.uniform(k1, (4 * hidden_size, in_dim), jnp.float32, -bound, bound)
            w_hh = jax.random.uniform(k2, (4 * hidden_size, hidden_size), jnp.float32, -bound, bound)
            b_ih = jax.random.uniform(k3, (4 * hidden_size,), jnp.float32, -bound, bound)
            b_hh = jax.random.uniform(k4, (4 * hidden_size,), jnp.float32, -bound, bound)
            w_ih_t.append(w_ih.T)                # (in_dim, 4H)
            w_hh_t.append(w_hh.T)                # (H, 4H)
            bias.append(b_ih + b_hh)             # (4H,)
        params.append(dict(w_ih_t=jnp.stack(w_ih_t),   # (2, in_dim, 4H)
                           w_hh_t=jnp.stack(w_hh_t),   # (2, H, 4H)
                           bias=jnp.stack(bias)))      # (2, 4H)
    return params


def _reorder_gates(a, H):
    """Permute the last (4H) axis from PyTorch order [i|f|g|o] to kernel order [i|f|o|g]."""
    return jnp.concatenate([a[..., :2 * H], a[..., 3 * H:4 * H], a[..., 2 * H:3 * H]], axis=-1)


def rnn_encoder_forward(x, lens, params, need_hidden_states=True, time_chunk=16):
    """Mirrors RNNEncoder.forward / rnn_wrapper (bidirectional LSTM, eval mode).

    x    : (B, T, D_in) float32
    lens : (B,) host ints (may contain zeros)
    returns out (B, max(lens), 2H) and (h, c) each (num_layers*2, B, H)
    """
    B_in, T, _D = x.shape
    H = params[0]["w_hh_t"].shape[1]
    L = len(params)
    lens_np = np.asarray(lens).astype(np.int64)
    T_out = int(lens_np.max()) if lens_np.size else 0

    if T_out == 0:                                    # all-zero lens edge case
        out = jnp.zeros((B_in, 0, 2 * H), jnp.float32)
        h = jnp.zeros((L * 2, B_in, H), jnp.float32)
        c = jnp.zeros_like(h)
        return (out, (h, c)) if need_hidden_states else out

    Tc = int(min(time_chunk, max(1, T_out)))
    T_pad = int(pl.cdiv(T_out, Tc)) * Tc
    B = int(pl.cdiv(B_in, 8)) * 8                     # pad batch to a full f32 sublane group

    # time-major input, padded along time (to a chunk multiple) and batch (to a sublane multiple)
    x_t = jnp.transpose(x[:, :T_out, :], (1, 0, 2))                    # (T_out, B_in, D)
    x_t = jnp.pad(x_t, ((0, T_pad - T_out), (0, B - B_in), (0, 0)))    # (T_pad, B, D)
    lens_i32 = jnp.zeros((B, 1), jnp.int32).at[:B_in, 0].set(
        jnp.asarray(lens_np.astype(np.int32)))        # padded rows get len 0 -> always masked

    layer_in = x_t[None]                              # (1, T_pad, B, D): E=1 source slab
    hiddens, cells = [], []
    for p in params:
        E = layer_in.shape[0]
        in_dim = layer_in.shape[-1]
        # repack gate columns [i|f|g|o] -> [i|f|o|g]; split W_ih rows per source slab so the
        # fwd/bwd concat of the previous layer's output is folded into the fused projection.
        w_ih = _reorder_gates(p["w_ih_t"], H).reshape(2, E, in_dim, 4 * H)
        w_hh = _reorder_gates(p["w_hh_t"], H)
        bias = _reorder_gates(p["bias"], H).reshape(2, 1, 4 * H)
        y, h_n, c_n = bidir_lstm_layer(layer_in, w_ih, w_hh, bias, lens_i32, time_chunk=Tc)
        layer_in = y                                  # (2, T_pad, B, H), no concat needed
        hiddens.append(h_n)
        cells.append(c_n)
        # TODO(synk): inter-layer dropout (train-mode p=0.5) not applied; eval-mode semantics.

    # final output: (2, T_pad, B, H) -> (B, T_out, 2H) with [fwd, bwd] feature order
    out = jnp.transpose(layer_in, (2, 1, 0, 3)).reshape(B, T_pad, 2 * H)[:B_in, :T_out]
    h_all = jnp.concatenate(hiddens, axis=0)[:, :B_in]     # (L*2, B_in, H), PyTorch ordering
    c_all = jnp.concatenate(cells, axis=0)[:, :B_in]
    if not need_hidden_states:
        return out
    return out, (h_all, c_all)


# ------------------------- pure-JAX reference (sanity) ------------------------
def _lstm_dir_ref(x_tbd, mask, w_ih_t, w_hh_t, bias, reverse):
    T, B, _D = x_tbd.shape
    H = w_hh_t.shape[0]
    h = jnp.zeros((B, H), jnp.float32)
    c = jnp.zeros((B, H), jnp.float32)
    y = [None] * T
    order = range(T - 1, -1, -1) if reverse else range(T)
    for t in order:
        g = x_tbd[t] @ w_ih_t + h @ w_hh_t + bias
        i = jax.nn.sigmoid(g[:, :H])
        f = jax.nn.sigmoid(g[:, H:2 * H])
        gg = jnp.tanh(g[:, 2 * H:3 * H])
        o = jax.nn.sigmoid(g[:, 3 * H:])
        c_new = f * c + i * gg
        h_new = o * jnp.tanh(c_new)
        m = mask[t]
        h = jnp.where(m, h_new, h)
        c = jnp.where(m, c_new, c)
        y[t] = jnp.where(m, h_new, 0.0)
    return jnp.stack(y, 0), h, c


def rnn_encoder_ref(x, lens, params):
    lens_np = np.asarray(lens)
    T_out = int(lens_np.max())
    x_t = jnp.transpose(x[:, :T_out, :], (1, 0, 2))
    mask = jnp.asarray((np.arange(T_out)[:, None] < lens_np[None, :])[:, :, None])
    hiddens, cells = [], []
    layer_in = x_t
    for p in params:
        ys = []
        for d in range(2):
            y, h, c = _lstm_dir_ref(layer_in, mask, p["w_ih_t"][d], p["w_hh_t"][d],
                                    p["bias"][d], reverse=(d == 1))
            ys.append(y)
            hiddens.append(h)
            cells.append(c)
        layer_in = jnp.concatenate(ys, -1)
    return (jnp.transpose(layer_in, (1, 0, 2)),
            jnp.stack(hiddens, 0), jnp.stack(cells, 0))


# ------------------------------------ main ------------------------------------
if __name__ == "__main__":
    B, T, D, H, L = 4, 8, 16, 32, 2
    key = jax.random.PRNGKey(0)
    kx, kp = jax.random.split(key)
    x = jax.random.normal(kx, (B, T, D), jnp.float32)
    lens = np.array([7, 5, 0, 3], dtype=np.int64)   # includes a zero-length sample
    params = init_lstm_params(kp, D, H, L, bidirectional=True)

    # time_chunk=4 exercises multi-chunk carries, reversed-chunk walking, time + batch padding.
    out, (h_n, c_n) = rnn_encoder_forward(x, lens, params,
                                          need_hidden_states=True, time_chunk=4)
    jax.block_until_ready((out, h_n, c_n))

    out_r, h_r, c_r = rnn_encoder_ref(x, lens, params)
    T_out = int(lens.max())
    assert out.shape == (B, T_out, 2 * H)
    assert h_n.shape == (L * 2, B, H) and c_n.shape == (L * 2, B, H)
    assert np.allclose(np.asarray(out), np.asarray(out_r), atol=5e-5), \
        float(np.abs(np.asarray(out) - np.asarray(out_r)).max())
    assert np.allclose(np.asarray(h_n), np.asarray(h_r), atol=5e-5)
    assert np.allclose(np.asarray(c_n), np.asarray(c_r), atol=5e-5)

    print("KERNEL_OK")
</pallas_src>

<mosaic_0001>
module attributes {stable_mosaic.version = 11 : i64} {
  func.func @_bidir_lstm_layer_kernel(%arg0: i32, %arg1: i32, %arg2: memref<8x1xi32, #tpu.memory_space<vmem>>, %arg3: memref<1x4x8x16xf32, #tpu.memory_space<vmem>>, %arg4: memref<1x1x16x128xf32, #tpu.memory_space<vmem>>, %arg5: memref<1x1x128xf32, #tpu.memory_space<vmem>>, %arg6: memref<1x32x128xf32, #tpu.memory_space<vmem>>, %arg7: memref<1x4x8x32xf32, #tpu.memory_space<vmem>>, %arg8: memref<1x8x32xf32, #tpu.memory_space<vmem>>, %arg9: memref<1x8x32xf32, #tpu.memory_space<vmem>>, %arg10: memref<32x128xf32, #tpu.memory_space<vmem>>) attributes {dimension_semantics = [#tpu.dimension_semantics<parallel>, #tpu.dimension_semantics<arbitrary>], iteration_bounds = array<i64: 2, 2>, scalar_prefetch = 0 : i64, scratch_operands = 1 : i64, tpu.core_type = #tpu.core_type<tc>, window_params = [{pipeline_mode = #tpu.pipeline_mode<synchronous>, transform_indices = @transform_0, window_bounds = array<i64: 8, 1>}, {transform_indices = @transform_1, window_bounds = array<i64: 1, 4, 8, 16>}, {transform_indices = @transform_2, window_bounds = array<i64: 1, 1, 16, 128>}, {transform_indices = @transform_3, window_bounds = array<i64: 1, 1, 128>}, {transform_indices = @transform_4, window_bounds = array<i64: 1, 32, 128>}, {transform_indices = @transform_5, window_bounds = array<i64: 1, 4, 8, 32>}, {transform_indices = @transform_6, window_bounds = array<i64: 1, 8, 32>}, {transform_indices = @transform_7, window_bounds = array<i64: 1, 8, 32>}]} {
    %c0_i32 = arith.constant 0 : i32
    %0 = arith.cmpi eq, %arg1, %c0_i32 : i32
    %1 = arith.extui %0 : i1 to i32
    %c0_i32_0 = arith.constant 0 : i32
    %2 = arith.cmpi ne, %1, %c0_i32_0 : i32
    scf.if %2 {
      %cst_73 = arith.constant 0.000000e+00 : f32
      %209 = vector.broadcast %cst_73 : f32 to vector<8x32xf32>
      %c0_74 = arith.constant 0 : index
      %c0_75 = arith.constant 0 : index
      %c0_76 = arith.constant 0 : index
      %210 = vector.load %arg8[%c0_74, %c0_75, %c0_76] : memref<1x8x32xf32, #tpu.memory_space<vmem>>, vector<1x8x32xf32>
      %211 = vector.shape_cast %210 : vector<1x8x32xf32> to vector<8x32xf32>
      %212 = vector.shape_cast %209 : vector<8x32xf32> to vector<1x8x32xf32>
      tpu.vector_store %arg8[%c0_74, %c0_75, %c0_76], %212 {strides = array<i32>} : memref<1x8x32xf32, #tpu.memory_space<vmem>>, vector<1x8x32xf32>,
      %cst_77 = arith.constant 0.000000e+00 : f32
      %213 = vector.broadcast %cst_77 : f32 to vector<8x32xf32>
      %c0_78 = arith.constant 0 : index
      %c0_79 = arith.constant 0 : index
      %c0_80 = arith.constant 0 : index
      %214 = vector.load %arg9[%c0_78, %c0_79, %c0_80] : memref<1x8x32xf32, #tpu.memory_space<vmem>>, vector<1x8x32xf32>
      %215 = vector.shape_cast %214 : vector<1x8x32xf32> to vector<8x32xf32>
      %216 = vector.shape_cast %213 : vector<8x32xf32> to vector<1x8x32xf32>
      tpu.vector_store %arg9[%c0_78, %c0_79, %c0_80], %216 {strides = array<i32>} : memref<1x8x32xf32, #tpu.memory_space<vmem>>, vector<1x8x32xf32>,
    } else {
    }
    %c0 = arith.constant 0 : index
    %c0_1 = arith.constant 0 : index
    %c0_2 = arith.constant 0 : index
    %c0_3 = arith.constant 0 : index
    %3 = vector.load %arg3[%c0, %c0_1, %c0_2, %c0_3] : memref<1x4x8x16xf32, #tpu.memory_space<vmem>>, vector<1x4x8x16xf32>
    %4 = vector.shape_cast %3 : vector<1x4x8x16xf32> to vector<4x8x16xf32>
    %5 = vector.shape_cast %4 : vector<4x8x16xf32> to vector<32x16xf32>
    %c0_4 = arith.constant 0 : index
    %c0_5 = arith.constant 0 : index
    %c0_6 = arith.constant 0 : index
    %c0_7 = arith.constant 0 : index
    %6 = vector.load %arg4[%c0_4, %c0_5, %c0_6, %c0_7] : memref<1x1x16x128xf32, #tpu.memory_space<vmem>>, vector<1x1x16x128xf32>
    %7 = vector.shape_cast %6 : vector<1x1x16x128xf32> to vector<16x128xf32>
    %cst = arith.constant dense<0.000000e+00> : vector<32x128xf32>
    %8 = tpu.matmul %5, %7, %cst {dimension_numbers = #tpu.dot_dimension_numbers<[1], [0], [0], [1], [0, 0, 1, 1], [], []>} : vector<32x16xf32>, vector<16x128xf32>, vector<32x128xf32> -> vector<32x128xf32>
    %c0_8 = arith.constant 0 : index
    %c0_9 = arith.constant 0 : index
    %c0_10 = arith.constant 0 : index
    %9 = vector.load %arg5[%c0_8, %c0_9, %c0_10] : memref<1x1x128xf32, #tpu.memory_space<vmem>>, vector<1x1x128xf32>
    %10 = vector.shape_cast %9 : vector<1x1x128xf32> to vector<1x128xf32>
    %11 = vector.broadcast %10 : vector<1x128xf32> to vector<32x128xf32>
    %12 = arith.addf %8, %11 : vector<32x128xf32>
    %c0_11 = arith.constant 0 : index
    %c0_12 = arith.constant 0 : index
    %13 = vector.load %arg10[%c0_11, %c0_12] : memref<32x128xf32, #tpu.memory_space<vmem>>, vector<32x128xf32>
    tpu.vector_store %arg10[%c0_11, %c0_12], %12 {strides = array<i32>} : memref<32x128xf32, #tpu.memory_space<vmem>>, vector<32x128xf32>,
    %c0_13 = arith.constant 0 : index
    %c0_14 = arith.constant 0 : index
    %14 = vector.load %arg2[%c0_13, %c0_14] : memref<8x1xi32, #tpu.memory_space<vmem>>, vector<8x1xi32>
    %c0_15 = arith.constant 0 : index
    %c0_16 = arith.constant 0 : index
    %c0_17 = arith.constant 0 : index
    %15 = vector.load %arg6[%c0_15, %c0_16, %c0_17] : memref<1x32x128xf32, #tpu.memory_space<vmem>>, vector<1x32x128xf32>
    %16 = vector.shape_cast %15 : vector<1x32x128xf32> to vector<32x128xf32>
    %c1_i32 = arith.constant 1 : i32
    %17 = arith.subi %c1_i32, %arg0 : i32
    %18 = arith.muli %17, %arg1 : i32
    %c1_i32_18 = arith.constant 1 : i32
    %19 = arith.subi %c1_i32_18, %arg1 : i32
    %20 = arith.muli %arg0, %19 : i32
    %21 = arith.addi %18, %20 : i32
    %c4_i32 = arith.constant 4 : i32
    %22 = arith.muli %21, %c4_i32 : i32
    %c0_19 = arith.constant 0 : index
    %c0_20 = arith.constant 0 : index
    %c0_21 = arith.constant 0 : index
    %23 = vector.load %arg8[%c0_19, %c0_20, %c0_21] : memref<1x8x32xf32, #tpu.memory_space<vmem>>, vector<1x8x32xf32>
    %24 = vector.shape_cast %23 : vector<1x8x32xf32> to vector<8x32xf32>
    %c0_22 = arith.constant 0 : index
    %c0_23 = arith.constant 0 : index
    %c0_24 = arith.constant 0 : index
    %25 = vector.load %arg9[%c0_22, %c0_23, %c0_24] : memref<1x8x32xf32, #tpu.memory_space<vmem>>, vector<1x8x32xf32>
    %26 = vector.shape_cast %25 : vector<1x8x32xf32> to vector<8x32xf32>
    %c0_i32_25 = arith.constant 0 : i32
    %c1_i32_26 = arith.constant 1 : i32
    %27 = arith.subi %c1_i32_26, %arg0 : i32
    %28 = arith.muli %27, %c0_i32_25 : i32
    %c3_i32 = arith.constant 3 : i32
    %29 = arith.subi %c3_i32, %c0_i32_25 : i32
    %30 = arith.muli %arg0, %29 : i32
    %31 = arith.addi %28, %30 : i32
    %32 = arith.addi %22, %31 : i32
    %c8_i32 = arith.constant 8 : i32
    %33 = arith.muli %31, %c8_i32 : i32
    %34 = tpu.assume_multiple %33, 8 : i32
    %35 = arith.index_cast %34 : i32 to index
    %c0_27 = arith.constant 0 : index
    %36 = vector.load %arg10[%35, %c0_27] : memref<32x128xf32, #tpu.memory_space<vmem>>, vector<8x128xf32>
    %cst_28 = arith.constant dense<0.000000e+00> : vector<8x128xf32>
    %37 = tpu.matmul %24, %16, %cst_28 {dimension_numbers = #tpu.dot_dimension_numbers<[1], [0], [0], [1], [0, 0, 1, 1], [], []>} : vector<8x32xf32>, vector<32x128xf32>, vector<8x128xf32> -> vector<8x128xf32>
    %38 = arith.addf %36, %37 : vector<8x128xf32>
    %39 = vector.extract_strided_slice %38 {offsets = [0, 0], sizes = [8, 96], strides = [1, 1]} : vector<8x128xf32> to vector<8x96xf32>
    %40 = arith.negf %39 : vector<8x96xf32>
    %41 = math.exp %40 : vector<8x96xf32>
    %cst_29 = arith.constant 1.000000e+00 : f32
    %42 = vector.broadcast %cst_29 : f32 to vector<8x96xf32>
    %43 = arith.addf %42, %41 : vector<8x96xf32>
    %44 = arith.divf %42, %43 : vector<8x96xf32>
    %45 = vector.extract_strided_slice %44 {offsets = [0, 0], sizes = [8, 32], strides = [1, 1]} : vector<8x96xf32> to vector<8x32xf32>
    %46 = vector.extract_strided_slice %44 {offsets = [0, 32], sizes = [8, 32], strides = [1, 1]} : vector<8x96xf32> to vector<8x32xf32>
    %47 = vector.extract_strided_slice %44 {offsets = [0, 64], sizes = [8, 32], strides = [1, 1]} : vector<8x96xf32> to vector<8x32xf32>
    %48 = vector.extract_strided_slice %38 {offsets = [0, 96], sizes = [8, 32], strides = [1, 1]} : vector<8x128xf32> to vector<8x32xf32>
    %49 = math.tanh %48 : vector<8x32xf32>
    %50 = arith.mulf %46, %26 : vector<8x32xf32>
    %51 = arith.mulf %45, %49 : vector<8x32xf32>
    %52 = arith.addf %50, %51 : vector<8x32xf32>
    %53 = math.tanh %52 : vector<8x32xf32>
    %54 = arith.mulf %47, %53 : vector<8x32xf32>
    %55 = vector.broadcast %32 : i32 to vector<8x1xi32>
    %56 = arith.cmpi sgt, %14, %55 : vector<8x1xi32>
    %cst_30 = arith.constant 0.000000e+00 : f32
    %57 = vector.shape_cast %56 : vector<8x1xi1> to vector<8x1xi1>
    %58 = vector.broadcast %57 : vector<8x1xi1> to vector<8x32xi1>
    %59 = vector.broadcast %cst_30 : f32 to vector<8x32xf32>
    %60 = arith.select %58, %54, %59 : vector<8x32xi1>, vector<8x32xf32>
    %c0_31 = arith.constant 0 : index
    %61 = arith.index_cast %31 : i32 to index
    %c0_32 = arith.constant 0 : index
    %c0_33 = arith.constant 0 : index
    %62 = vector.load %arg7[%c0_31, %61, %c0_32, %c0_33] : memref<1x4x8x32xf32, #tpu.memory_space<vmem>>, vector<1x1x8x32xf32>
    %63 = vector.shape_cast %62 : vector<1x1x8x32xf32> to vector<8x32xf32>
    %64 = vector.shape_cast %60 : vector<8x32xf32> to vector<1x1x8x32xf32>
    tpu.vector_store %arg7[%c0_31, %61, %c0_32, %c0_33], %64 {strides = array<i32>} : memref<1x4x8x32xf32, #tpu.memory_space<vmem>>, vector<1x1x8x32xf32>,
    %65 = vector.shape_cast %56 : vector<8x1xi1> to vector<8x1xi1>
    %66 = vector.broadcast %65 : vector<8x1xi1> to vector<8x32xi1>
    %67 = arith.select %66, %54, %24 : vector<8x32xi1>, vector<8x32xf32>
    %68 = vector.shape_cast %56 : vector<8x1xi1> to vector<8x1xi1>
    %69 = vector.broadcast %68 : vector<8x1xi1> to vector<8x32xi1>
    %70 = arith.select %69, %52, %26 : vector<8x32xi1>, vector<8x32xf32>
    %c1_i32_34 = arith.constant 1 : i32
    %c1_i32_35 = arith.constant 1 : i32
    %71 = arith.subi %c1_i32_35, %arg0 : i32
    %72 = arith.muli %71, %c1_i32_34 : i32
    %c3_i32_36 = arith.constant 3 : i32
    %73 = arith.subi %c3_i32_36, %c1_i32_34 : i32
    %74 = arith.muli %arg0, %73 : i32
    %75 = arith.addi %72, %74 : i32
    %76 = arith.addi %22, %75 : i32
    %c8_i32_37 = arith.constant 8 : i32
    %77 = arith.muli %75, %c8_i32_37 : i32
    %78 = tpu.assume_multiple %77, 8 : i32
    %79 = arith.index_cast %78 : i32 to index
    %c0_38 = arith.constant 0 : index
    %80 = vector.load %arg10[%79, %c0_38] : memref<32x128xf32, #tpu.memory_space<vmem>>, vector<8x128xf32>
    %cst_39 = arith.constant dense<0.000000e+00> : vector<8x128xf32>
    %81 = tpu.matmul %67, %16, %cst_39 {dimension_numbers = #tpu.dot_dimension_numbers<[1], [0], [0], [1], [0, 0, 1, 1], [], []>} : vector<8x32xf32>, vector<32x128xf32>, vector<8x128xf32> -> vector<8x128xf32>
    %82 = arith.addf %80, %81 : vector<8x128xf32>
    %83 = vector.extract_strided_slice %82 {offsets = [0, 0], sizes = [8, 96], strides = [1, 1]} : vector<8x128xf32> to vector<8x96xf32>
    %84 = arith.negf %83 : vector<8x96xf32>
    %85 = math.exp %84 : vector<8x96xf32>
    %cst_40 = arith.constant 1.000000e+00 : f32
    %86 = vector.broadcast %cst_40 : f32 to vector<8x96xf32>
    %87 = arith.addf %86, %85 : vector<8x96xf32>
    %88 = arith.divf %86, %87 : vector<8x96xf32>
    %89 = vector.extract_strided_slice %88 {offsets = [0, 0], sizes = [8, 32], strides = [1, 1]} : vector<8x96xf32> to vector<8x32xf32>
    %90 = vector.extract_strided_slice %88 {offsets = [0, 32], sizes = [8, 32], strides = [1, 1]} : vector<8x96xf32> to vector<8x32xf32>
    %91 = vector.extract_strided_slice %88 {offsets = [0, 64], sizes = [8, 32], strides = [1, 1]} : vector<8x96xf32> to vector<8x32xf32>
    %92 = vector.extract_strided_slice %82 {offsets = [0, 96], sizes = [8, 32], strides = [1, 1]} : vector<8x128xf32> to vector<8x32xf32>
    %93 = math.tanh %92 : vector<8x32xf32>
    %94 = arith.mulf %90, %70 : vector<8x32xf32>
    %95 = arith.mulf %89, %93 : vector<8x32xf32>
    %96 = arith.addf %94, %95 : vector<8x32xf32>
    %97 = math.tanh %96 : vector<8x32xf32>
    %98 = arith.mulf %91, %97 : vector<8x32xf32>
    %99 = vector.broadcast %76 : i32 to vector<8x1xi32>
    %100 = arith.cmpi sgt, %14, %99 : vector<8x1xi32>
    %cst_41 = arith.constant 0.000000e+00 : f32
    %101 = vector.shape_cast %100 : vector<8x1xi1> to vector<8x1xi1>
    %102 = vector.broadcast %101 : vector<8x1xi1> to vector<8x32xi1>
    %103 = vector.broadcast %cst_41 : f32 to vector<8x32xf32>
    %104 = arith.select %102, %98, %103 : vector<8x32xi1>, vector<8x32xf32>
    %c0_42 = arith.constant 0 : index
    %105 = arith.index_cast %75 : i32 to index
    %c0_43 = arith.constant 0 : index
    %c0_44 = arith.constant 0 : index
    %106 = vector.load %arg7[%c0_42, %105, %c0_43, %c0_44] : memref<1x4x8x32xf32, #tpu.memory_space<vmem>>, vector<1x1x8x32xf32>
    %107 = vector.shape_cast %106 : vector<1x1x8x32xf32> to vector<8x32xf32>
    %108 = vector.shape_cast %104 : vector<8x32xf32> to vector<1x1x8x32xf32>
    tpu.vector_store %arg7[%c0_42, %105, %c0_43, %c0_44], %108 {strides = array<i32>} : memref<1x4x8x32xf32, #tpu.memory_space<vmem>>, vector<1x1x8x32xf32>,
    %109 = vector.shape_cast %100 : vector<8x1xi1> to vector<8x1xi1>
    %110 = vector.broadcast %109 : vector<8x1xi1> to vector<8x32xi1>
    %111 = arith.select %110, %98, %67 : vector<8x32xi1>, vector<8x32xf32>
    %112 = vector.shape_cast %100 : vector<8x1xi1> to vector<8x1xi1>
    %113 = vector.broadcast %112 : vector<8x1xi1> to vector<8x32xi1>
    %114 = arith.select %113, %96, %70 : vector<8x32xi1>, vector<8x32xf32>
    %c2_i32 = arith.constant 2 : i32
    %c1_i32_45 = arith.constant 1 : i32
    %115 = arith.subi %c1_i32_45, %arg0 : i32
    %116 = arith.muli %115, %c2_i32 : i32
    %c3_i32_46 = arith.constant 3 : i32
    %117 = arith.subi %c3_i32_46, %c2_i32 : i32
    %118 = arith.muli %arg0, %117 : i32
    %119 = arith.addi %116, %118 : i32
    %120 = arith.addi %22, %119 : i32
    %c8_i32_47 = arith.constant 8 : i32
    %121 = arith.muli %119, %c8_i32_47 : i32
    %122 = tpu.assume_multiple %121, 8 : i32
    %123 = arith.index_cast %122 : i32 to index
    %c0_48 = arith.constant 0 : index
    %124 = vector.load %arg10[%123, %c0_48] : memref<32x128xf32, #tpu.memory_space<vmem>>, vector<8x128xf32>
    %cst_49 = arith.constant dense<0.000000e+00> : vector<8x128xf32>
    %125 = tpu.matmul %111, %16, %cst_49 {dimension_numbers = #tpu.dot_dimension_numbers<[1], [0], [0], [1], [0, 0, 1, 1], [], []>} : vector<8x32xf32>, vector<32x128xf32>, vector<8x128xf32> -> vector<8x128xf32>
    %126 = arith.addf %124, %125 : vector<8x128xf32>
    %127 = vector.extract_strided_slice %126 {offsets = [0, 0], sizes = [8, 96], strides = [1, 1]} : vector<8x128xf32> to vector<8x96xf32>
    %128 = arith.negf %127 : vector<8x96xf32>
    %129 = math.exp %128 : vector<8x96xf32>
    %cst_50 = arith.constant 1.000000e+00 : f32
    %130 = vector.broadcast %cst_50 : f32 to vector<8x96xf32>
    %131 = arith.addf %130, %129 : vector<8x96xf32>
    %132 = arith.divf %130, %131 : vector<8x96xf32>
    %133 = vector.extract_strided_slice %132 {offsets = [0, 0], sizes = [8, 32], strides = [1, 1]} : vector<8x96xf32> to vector<8x32xf32>
    %134 = vector.extract_strided_slice %132 {offsets = [0, 32], sizes = [8, 32], strides = [1, 1]} : vector<8x96xf32> to vector<8x32xf32>
    %135 = vector.extract_strided_slice %132 {offsets = [0, 64], sizes = [8, 32], strides = [1, 1]} : vector<8x96xf32> to vector<8x32xf32>
    %136 = vector.extract_strided_slice %126 {offsets = [0, 96], sizes = [8, 32], strides = [1, 1]} : vector<8x128xf32> to vector<8x32xf32>
    %137 = math.tanh %136 : vector<8x32xf32>
    %138 = arith.mulf %134, %114 : vector<8x32xf32>
    %139 = arith.mulf %133, %137 : vector<8x32xf32>
    %140 = arith.addf %138, %139 : vector<8x32xf32>
    %141 = math.tanh %140 : vector<8x32xf32>
    %142 = arith.mulf %135, %141 : vector<8x32xf32>
    %143 = vector.broadcast %120 : i32 to vector<8x1xi32>
    %144 = arith.cmpi sgt, %14, %143 : vector<8x1xi32>
    %cst_51 = arith.constant 0.000000e+00 : f32
    %145 = vector.shape_cast %144 : vector<8x1xi1> to vector<8x1xi1>
    %146 = vector.broadcast %145 : vector<8x1xi1> to vector<8x32xi1>
    %147 = vector.broadcast %cst_51 : f32 to vector<8x32xf32>
    %148 = arith.select %146, %142, %147 : vector<8x32xi1>, vector<8x32xf32>
    %c0_52 = arith.constant 0 : index
    %149 = arith.index_cast %119 : i32 to index
    %c0_53 = arith.constant 0 : index
    %c0_54 = arith.constant 0 : index
    %150 = vector.load %arg7[%c0_52, %149, %c0_53, %c0_54] : memref<1x4x8x32xf32, #tpu.memory_space<vmem>>, vector<1x1x8x32xf32>
    %151 = vector.shape_cast %150 : vector<1x1x8x32xf32> to vector<8x32xf32>
    %152 = vector.shape_cast %148 : vector<8x32xf32> to vector<1x1x8x32xf32>
    tpu.vector_store %arg7[%c0_52, %149, %c0_53, %c0_54], %152 {strides = array<i32>} : memref<1x4x8x32xf32, #tpu.memory_space<vmem>>, vector<1x1x8x32xf32>,
    %153 = vector.shape_cast %144 : vector<8x1xi1> to vector<8x1xi1>
    %154 = vector.broadcast %153 : vector<8x1xi1> to vector<8x32xi1>
    %155 = arith.select %154, %142, %111 : vector<8x32xi1>, vector<8x32xf32>
    %156 = vector.shape_cast %144 : vector<8x1xi1> to vector<8x1xi1>
    %157 = vector.broadcast %156 : vector<8x1xi1> to vector<8x32xi1>
    %158 = arith.select %157, %140, %114 : vector<8x32xi1>, vector<8x32xf32>
    %c3_i32_55 = arith.constant 3 : i32
    %c1_i32_56 = arith.constant 1 : i32
    %159 = arith.subi %c1_i32_56, %arg0 : i32
    %160 = arith.muli %159, %c3_i32_55 : i32
    %c3_i32_57 = arith.constant 3 : i32
    %161 = arith.subi %c3_i32_57, %c3_i32_55 : i32
    %162 = arith.muli %arg0, %161 : i32
    %163 = arith.addi %160, %162 : i32
    %164 = arith.addi %22, %163 : i32
    %c8_i32_58 = arith.constant 8 : i32
    %165 = arith.muli %163, %c8_i32_58 : i32
    %166 = tpu.assume_multiple %165, 8 : i32
    %167 = arith.index_cast %166 : i32 to index
    %c0_59 = arith.constant 0 : index
    %168 = vector.load %arg10[%167, %c0_59] : memref<32x128xf32, #tpu.memory_space<vmem>>, vector<8x128xf32>
    %cst_60 = arith.constant dense<0.000000e+00> : vector<8x128xf32>
    %169 = tpu.matmul %155, %16, %cst_60 {dimension_numbers = #tpu.dot_dimension_numbers<[1], [0], [0], [1], [0, 0, 1, 1], [], []>} : vector<8x32xf32>, vector<32x128xf32>, vector<8x128xf32> -> vector<8x128xf32>
    %170 = arith.addf %168, %169 : vector<8x128xf32>
    %171 = vector.extract_strided_slice %170 {offsets = [0, 0], sizes = [8, 96], strides = [1, 1]} : vector<8x128xf32> to vector<8x96xf32>
    %172 = arith.negf %171 : vector<8x96xf32>
    %173 = math.exp %172 : vector<8x96xf32>
    %cst_61 = arith.constant 1.000000e+00 : f32
    %174 = vector.broadcast %cst_61 : f32 to vector<8x96xf32>
    %175 = arith.addf %174, %173 : vector<8x96xf32>
    %176 = arith.divf %174, %175 : vector<8x96xf32>
    %177 = vector.extract_strided_slice %176 {offsets = [0, 0], sizes = [8, 32], strides = [1, 1]} : vector<8x96xf32> to vector<8x32xf32>
    %178 = vector.extract_strided_slice %176 {offsets = [0, 32], sizes = [8, 32], strides = [1, 1]} : vector<8x96xf32> to vector<8x32xf32>
    %179 = vector.extract_strided_slice %176 {offsets = [0, 64], sizes = [8, 32], strides = [1, 1]} : vector<8x96xf32> to vector<8x32xf32>
    %180 = vector.extract_strided_slice %170 {offsets = [0, 96], sizes = [8, 32], strides = [1, 1]} : vector<8x128xf32> to vector<8x32xf32>
    %181 = math.tanh %180 : vector<8x32xf32>
    %182 = arith.mulf %178, %158 : vector<8x32xf32>
    %183 = arith.mulf %177, %181 : vector<8x32xf32>
    %184 = arith.addf %182, %183 : vector<8x32xf32>
    %185 = math.tanh %184 : vector<8x32xf32>
    %186 = arith.mulf %179, %185 : vector<8x32xf32>
    %187 = vector.broadcast %164 : i32 to vector<8x1xi32>
    %188 = arith.cmpi sgt, %14, %187 : vector<8x1xi32>
    %cst_62 = arith.constant 0.000000e+00 : f32
    %189 = vector.shape_cast %188 : vector<8x1xi1> to vector<8x1xi1>
    %190 = vector.broadcast %189 : vector<8x1xi1> to vector<8x32xi1>
    %191 = vector.broadcast %cst_62 : f32 to vector<8x32xf32>
    %192 = arith.select %190, %186, %191 : vector<8x32xi1>, vector<8x32xf32>
    %c0_63 = arith.constant 0 : index
    %193 = arith.index_cast %163 : i32 to index
    %c0_64 = arith.constant 0 : index
    %c0_65 = arith.constant 0 : index
    %194 = vector.load %arg7[%c0_63, %193, %c0_64, %c0_65] : memref<1x4x8x32xf32, #tpu.memory_space<vmem>>, vector<1x1x8x32xf32>
    %195 = vector.shape_cast %194 : vector<1x1x8x32xf32> to vector<8x32xf32>
    %196 = vector.shape_cast %192 : vector<8x32xf32> to vector<1x1x8x32xf32>
    tpu.vector_store %arg7[%c0_63, %193, %c0_64, %c0_65], %196 {strides = array<i32>} : memref<1x4x8x32xf32, #tpu.memory_space<vmem>>, vector<1x1x8x32xf32>,
    %197 = vector.shape_cast %188 : vector<8x1xi1> to vector<8x1xi1>
    %198 = vector.broadcast %197 : vector<8x1xi1> to vector<8x32xi1>
    %199 = arith.select %198, %186, %155 : vector<8x32xi1>, vector<8x32xf32>
    %200 = vector.shape_cast %188 : vector<8x1xi1> to vector<8x1xi1>
    %201 = vector.broadcast %200 : vector<8x1xi1> to vector<8x32xi1>
    %202 = arith.select %201, %184, %158 : vector<8x32xi1>, vector<8x32xf32>
    %c4_i32_66 = arith.constant 4 : i32
    %c0_67 = arith.constant 0 : index
    %c0_68 = arith.constant 0 : index
    %c0_69 = arith.constant 0 : index
    %203 = vector.load %arg8[%c0_67, %c0_68, %c0_69] : memref<1x8x32xf32, #tpu.memory_space<vmem>>, vector<1x8x32xf32>
    %204 = vector.shape_cast %203 : vector<1x8x32xf32> to vector<8x32xf32>
    %205 = vector.shape_cast %199 : vector<8x32xf32> to vector<1x8x32xf32>
    tpu.vector_store %arg8[%c0_67, %c0_68, %c0_69], %205 {strides = array<i32>} : memref<1x8x32xf32, #tpu.memory_space<vmem>>, vector<1x8x32xf32>,
    %c0_70 = arith.constant 0 : index
    %c0_71 = arith.constant 0 : index
    %c0_72 = arith.constant 0 : index
    %206 = vector.load %arg9[%c0_70, %c0_71, %c0_72] : memref<1x8x32xf32, #tpu.memory_space<vmem>>, vector<1x8x32xf32>
    %207 = vector.shape_cast %206 : vector<1x8x32xf32> to vector<8x32xf32>
    %208 = vector.shape_cast %202 : vector<8x32xf32> to vector<1x8x32xf32>
    tpu.vector_store %arg9[%c0_70, %c0_71, %c0_72], %208 {strides = array<i32>} : memref<1x8x32xf32, #tpu.memory_space<vmem>>, vector<1x8x32xf32>,
    return
  }
  func.func @transform_0(%arg0: i32, %arg1: i32) -> (i32, i32) {
    %c0_i32 = arith.constant 0 : i32
    %c0_i32_0 = arith.constant 0 : i32
    %c0_i32_1 = arith.constant 0 : i32
    return %c0_i32, %c0_i32_0 : i32, i32
  }
  func.func @transform_1(%arg0: i32, %arg1: i32) -> (i32, i32, i32, i32) {
    %c1_i32 = arith.constant 1 : i32
    %0 = arith.subi %c1_i32, %arg0 : i32
    %1 = arith.muli %0, %arg1 : i32
    %c1_i32_0 = arith.constant 1 : i32
    %2 = arith.subi %c1_i32_0, %arg1 : i32
    %3 = arith.muli %arg0, %2 : i32
    %4 = arith.addi %1, %3 : i32
    %c0_i32 = arith.constant 0 : i32
    %c0_i32_1 = arith.constant 0 : i32
    %c0_i32_2 = arith.constant 0 : i32
    %c0_i32_3 = arith.constant 0 : i32
    return %c0_i32, %4, %c0_i32_1, %c0_i32_2 : i32, i32, i32, i32
  }
  func.func @transform_2(%arg0: i32, %arg1: i32) -> (i32, i32, i32, i32) {
    %c0_i32 = arith.constant 0 : i32
    %c0_i32_0 = arith.constant 0 : i32
    %c0_i32_1 = arith.constant 0 : i32
    %c0_i32_2 = arith.constant 0 : i32
    return %arg0, %c0_i32, %c0_i32_0, %c0_i32_1 : i32, i32, i32, i32
  }
  func.func @transform_3(%arg0: i32, %arg1: i32) -> (i32, i32, i32) {
    %c0_i32 = arith.constant 0 : i32
    %c0_i32_0 = arith.constant 0 : i32
    %c0_i32_1 = arith.constant 0 : i32
    return %arg0, %c0_i32, %c0_i32_0 : i32, i32, i32
  }
  func.func @transform_4(%arg0: i32, %arg1: i32) -> (i32, i32, i32) {
    %c0_i32 = arith.constant 0 : i32
    %c0_i32_0 = arith.constant 0 : i32
    %c0_i32_1 = arith.constant 0 : i32
    return %arg0, %c0_i32, %c0_i32_0 : i32, i32, i32
  }
  func.func @transform_5(%arg0: i32, %arg1: i32) -> (i32, i32, i32, i32) {
    %c1_i32 = arith.constant 1 : i32
    %0 = arith.subi %c1_i32, %arg0 : i32
    %1 = arith.muli %0, %arg1 : i32
    %c1_i32_0 = arith.constant 1 : i32
    %2 = arith.subi %c1_i32_0, %arg1 : i32
    %3 = arith.muli %arg0, %2 : i32
    %4 = arith.addi %1, %3 : i32
    %c0_i32 = arith.constant 0 : i32
    %c0_i32_1 = arith.constant 0 : i32
    %c0_i32_2 = arith.constant 0 : i32
    return %arg0, %4, %c0_i32, %c0_i32_1 : i32, i32, i32, i32
  }
  func.func @transform_6(%arg0: i32, %arg1: i32) -> (i32, i32, i32) {
    %c0_i32 = arith.constant 0 : i32
    %c0_i32_0 = arith.constant 0 : i32
    %c0_i32_1 = arith.constant 0 : i32
    return %arg0, %c0_i32, %c0_i32_0 : i32, i32, i32
  }
  func.func @transform_7(%arg0: i32, %arg1: i32) -> (i32, i32, i32) {
    %c0_i32 = arith.constant 0 : i32
    %c0_i32_0 = arith.constant 0 : i32
    %c0_i32_1 = arith.constant 0 : i32
    return %arg0, %c0_i32, %c0_i32_0 : i32, i32, i32
  }
}

</mosaic_0001>

<bundles_post_ra>
// kernel: tpu_custom_call.1
= control target key start
LH: loop header
LB: loop body
LE: loop exit
PB: predicated region body
PF: predicated region fallthrough
CT: control target
= control target key end

     0   :  { %s2699_s0 = inlined_call_operand.vmem [shape: s32[8,1], index: 0, kind: input, shape index: {}]   ;;  %s2700_s1 = inlined_call_operand.hbm [shape: f32[1,8,8,16], index: 1, kind: input, shape index: {}]   ;;  %s2701_s2 = inlined_call_operand.hbm [shape: f32[2,1,16,128], index: 2, kind: input, shape index: {}]   ;;  %s2702_s3 = inlined_call_operand.vmem [shape: f32[2,1,128], index: 3, kind: input, shape index: {}]   ;;  %s2703_s4 = inlined_call_operand.hbm [shape: f32[2,32,128], index: 4, kind: input, shape index: {}]   ;;  %s2704_s5 = inlined_call_operand.hbm [shape: f32[2,8,8,32], index: 5, kind: output, shape index: {0}]   ;;  %s2705_s6 = inlined_call_operand.hbm [shape: f32[2,8,32], index: 6, kind: output, shape index: {1}]   ;;  %s2706_s7 = inlined_call_operand.hbm [shape: f32[2,8,32], index: 7, kind: output, shape index: {2}]  }
   0x1   :  { %2746 = sst [smem:[#allocation35_spill]] %s2699_s0 }
   0x2   :  { %2747 = sst [smem:[#allocation36_spill]] %s2700_s1 }
   0x3   :  { %2748 = sst [smem:[#allocation37_spill]] %s2701_s2 }
   0x4   :  { %2749 = sst [smem:[#allocation38_spill]] %s2702_s3 }
   0x5   :  { %2750 = sst [smem:[#allocation39_spill]] %s2703_s4 }
   0x6   :  { %2751 = sst [smem:[#allocation40_spill]] %s2704_s5 }
   0x7   :  { %2752 = sst [smem:[#allocation41_spill]] %s2705_s6 }
   0x8   :  { %2753 = sst [smem:[#allocation42_spill]] %s2706_s7 }
   0x9   :  { %13 = vsyncpa [#allocation4], 0 }
   0xa   :  { %15 = vsyncpa [#allocation4 + $0x1], 0 }
   0xb   :  { %16 = vsyncpa [#allocation7], 0 }
   0xc   :  { %18 = vsyncpa [#allocation7 + $0x1], 0 }
   0xd   :  { %19 = vsyncpa [#allocation5], 0 }
   0xe   :  { %21 = vsyncpa [#allocation5 + $0x1], 0 }
   0xf   :  { %22 = vsyncpa [#allocation11], 0 }
  0x10   :  { %24 = vsyncpa [#allocation11 + $0x1], 0  ;;  %s2051_s24 = smov 0   ;;  %s2053_s25 = smov 0  }
  0x11   :  { %s2055_s26 = smov 0   ;;  %s2057_s27 = smov 0  }
  0x12   :  { %s2059_s28 = smov 0   ;;  %s2061_s29 = smov 0  }
  0x13   :  { %s2063_s30 = smov 0   ;;  %s2065_s8 = smov 0  }
  0x14   :  { %s2067_s9 = smov 0   ;;  %s2069_s10 = smov 0  }
  0x15   :  { %s2071_s11 = smov 0   ;;  %s2073_s12 = smov 0  }
  0x16   :  { %s2075_s13 = smov 0   ;;  %s2077_s14 = smov 0  }
  0x17 LB: > { %2754 = sst [smem:[#allocation17_spill]] %s1948_s26  ;;  %s2120_s15 = sadd.s32 4294967295, %s1992_s14   ;;  %s1992_s14 = sphi %s2077_s14, %s30_s14   ;;  %s1988_s13 = sphi %s2075_s13, %s2834_s13   ;;  %s1984_s12 = sphi %s2073_s12, %s2833_s12   ;;  %s1980_s11 = sphi %s2071_s11, %s2832_s11   ;;  %s1976_s10 = sphi %s2069_s10, %s2831_s10   ;;  %s1972_s9 = sphi %s2067_s9, %s2830_s9   ;;  %s1968_s8 = sphi %s2065_s8, %s2829_s8   ;;  %s1964_s30 = sphi %s2063_s30, %s2828_s30   ;;  %s1960_s29 = sphi %s2061_s29, %s2827_s29   ;;  %s1956_s28 = sphi %s2059_s28, %s2826_s28   ;;  %s1952_s27 = sphi %s2057_s27, %s2825_s27   ;;  %s1948_s26 = sphi %s2055_s26, %s2824_s26   ;;  %s1944_s25 = sphi %s2053_s25, %s2837_s25   ;;  %s1940_s24 = sphi %s2051_s24, %s2836_s24  }
  0x18   : > { %2755 = sst [smem:[#allocation18_spill]] %s1956_s28  ;;  %s2707_s16 = sadd.s32 4294967294, %s1992_s14  }
  0x19   : > { %2756 = sst [smem:[#allocation19_spill]] %s1960_s29  ;;  %p88_p0 = scmp.eq.s32.totalorder %s1992_s14, 0 }
  0x1a   : > { %2757 = sst [smem:[#allocation20_spill]] %s1968_s8  ;;  %p2719_p1 = scmp.eq.s32.totalorder %s2120_s15, 0 }
  0x1b   : > { %2758 = sst [smem:[#allocation21_spill]] %s1972_s9  ;;  %p113_p2 = scmp.ne.s32.totalorder %s1960_s29, %s1956_s28 }
  0x1c   : > { %2759 = sst [smem:[#allocation22_spill]] %s1976_s10  ;;  %p119_p3 = scmp.ne.s32.totalorder %s1956_s28, %s1952_s27 }
  0x1d   : > { %2760 = sst [smem:[#allocation23_spill]] %s1980_s11  ;;  %p2718_p4 = scmp.eq.s32.totalorder %s2120_s15, 3 }
  0x1e   : > { %2761 = sst [smem:[#allocation24_spill]] %s1984_s12  ;;  %p2132_p5 = por %p113_p2, %p88_p0 }
  0x1f   : > { %2762 = sst [smem:[#allocation25_spill]] %s1988_s13  ;;  %p2138_p6 = scmp.eq.s32.totalorder %s2707_s16, 3 }
  0x20   : > { %p2144_p7 = por %p119_p3, %p2719_p1  ;;  %p2150_p8 = por %p2718_p4, %p113_p2 }
  0x21   : > { %p2156_p9 = por %p2138_p6, %p119_p3  ;;  %p2717_p10 = scmp.lt.s32.totalorder %s1992_s14, 4 }
  0x22   : > { %s2765_s20 = scalar_select %p2144_p7, 1, 0 }
  0x23   : > { %s2767_s21 = scalar_select %p2150_p8, 1, 0 }
  0x24   : > { %2766 = sst [smem:[#allocation26_spill]] %s2765_s20  ;;  %s314_s23 = sand.u32 1, %s1992_s14  }
  0x25   : > { %2768 = sst [smem:[#allocation27_spill]] %s2767_s21  ;;  %s316_s27 = sand.u32 1, %s1960_s29  }
  0x26   : > { %s2769_s22 = scalar_select %p2156_p9, 1, 0 }
  0x27   : > { %s1386_s16 = sshll.u32 %s316_s27, 4  ;;  %s1431_s17 = sshll.u32 %s1988_s13, 8 }
  0x28   : > { %2770 = sst [smem:[#allocation28_spill]] %s2769_s22  ;;  %s318_s0 = scalar_lea.vmem [#allocation6], %s1386_s16 }
  0x29   : > { %s2771_s2 = sld [smem:[#allocation37_spill]]  ;;  %s325_s10 = sshll.u32 %s318_s0, 4  ;;  %s326_s10 = int_to_ptr.vmem [resolvable:$true] %s325_s10 }
  0x2a   : > { %p2171_p11 = pnand %p2717_p10, %p2132_p5  ;;  %s1389_s22 = sshll.u32 %s316_s27, 5 }
  0x2b   : > { %s2175_s3 = scalar_lea.sflag [#allocation7], %s314_s23  ;;  %s1717_s11 = scalar_lea.vmem %s326_s10, 256 }
  0x2c   : > { %p2729_p12 = pneg %p2171_p11  ;;  %p1718_p13 = scmp.ne.s32.totalorder %s326_s10, %s1717_s11 }
  0x2d   : > { %s1994_s0 = smov [#allocation6]  }
  0x2e   : > { %p1720_p2 = pnand %p1718_p13, %p2729_p12  ;;  %s1722_s6 = sshll.u32 %s1994_s0, 4  ;;  %s1723_s6 = int_to_ptr.vmem [resolvable:$false] %s1722_s6 }
  0x2f   : > { %s324_s5 = scalar_lea.hbm %s2771_s2, %s1431_s17  ;;  %s1724_s7 = scalar_lea.vmem %s1723_s6, 512 }
  0x30   : > { %p1721_p3 = pneg %p1720_p2  ;;  %p1725_p5 = scmp.lt.s32.totalorder %s326_s10, %s1723_s6 }
  0x31   : > { %p1726_p10 = scmp.lt.s32.totalorder %s1724_s7, %s1717_s11 }
  0x33   : > { %p1727_p4 = por %p1726_p10, %p1725_p5 }
  0x35   : > { %p1728_p1 = pnand %p1727_p4, %p1721_p3 }
  0x37   : > { %1731 = shalt.err (!%p1728_p1)
}
  0x38   : > { %s2720_s16 = smov 128   ;;  %s2722_s17 = smov 8  }
  0x39   : > { %1531 = dma.hbm_to_vmem [thread:$0]  (!%p2171_p11), %s324_s5, 256, %s326_s10, %s2175_s3, %s2720_s16, %s2720_s16, %s2722_s17  }
  0x3a   : > { %s345_s11 = scalar_lea.vmem [#allocation8], %s1389_s22  ;;  %p1392_p1 = scmp.ge.s32.totalorder %s1992_s14, 1 }
  0x3b   : > { %s2188_s18 = sshll.u32 %s345_s11, 4  ;;  %p360_p4 = scmp.lt.s32.totalorder %s1992_s14, 5  ;;  %s353_s18 = int_to_ptr.vmem [resolvable:$true] %s2188_s18 }
  0x3c   : > { %s39_s27 = sadd.s32 1, %s1984_s12  ;;  %s42_s0 = sadd.s32 1, %s1988_s13 }
  0x3d   : > { %p2192_p10 = pnand %p1392_p1, %p360_p4  ;;  %p40_p13 = scmp.ge.s32.totalorder %s39_s27, 2 }
  0x3e   : > { %s67_s6 = ssub.s32 1, %s1988_s13  ;;  %s69_s10 = ssub.s32 1, %s1984_s12 }
  0x3f   : > { %s68_s5 = smul.u32 %s1984_s12, %s67_s6  ;;  %s2839_s27 = smov (%p40_p13, %s39_s27), 0 }
  0x40   : > { %2774 = sst [smem:[#allocation29_spill]] %s2839_s27  ;;  %s2841_s0 = smov (!%p40_p13, %s42_s0), %s1988_s13 }
  0x41   : > { %s70_s22 = smul.u32 %s1988_s13, %s69_s10  ;;  %s74_s7 = ssub.s32 1, %s2839_s27 }
  0x42   : > { %p44_p2 = scmp.ge.s32.totalorder %s2841_s0, 2  ;;  %s80_s11 = sadd.s32 1, %s1972_s9 }
  0x43   : > { %s71_s16 = sadd.s32 %s70_s22, %s68_s5  ;;  %p87_p3 = scmp.ne.s32.totalorder %s1972_s9, %s1968_s8 }
  0x44   : > { %s2843_s0 = smov (%p44_p2, %s2841_s0), 0  ;;  %p93_p1 = scmp.ne.s32.totalorder %s1968_s8, %s1964_s30 }
  0x45   : > { %2775 = sst [smem:[#allocation30_spill]] %s2843_s0  ;;  %p2213_p5 = por %p88_p0, %p87_p3 }
  0x46   : > { %s72_s10 = ssub.s32 1, %s2843_s0  ;;  %s75_s5 = smul.u32 %s74_s7, %s2843_s0 }
  0x47   : > { %s73_s22 = smul.u32 %s72_s10, %s2839_s27  ;;  %p2777_p4 = scmp.eq.s32.totalorder %s2120_s15, 0 }
  0x48   : > { %s103_s2 = ssub.s32 %s1988_s13, %s2843_s0  ;;  %s196_s12 = sadd.s32 1, %s1948_s26 }
  0x49   : > { %p2224_p13 = por %p2777_p4, %p93_p1  ;;  %s76_s20 = sadd.s32 %s75_s5, %s73_s22 }
  0x4a   : > { %p104_p0 = scmp.eq.s32.totalorder %s103_s2, 0  ;;  %s77_s28 = ssub.s32 %s71_s16, %s76_s20 }
  0x4b   : > { %s2778_s17 = scalar_select %p2224_p13, 1, 0 }
  0x4c   : > { %p206_p2 = scmp.ne.s32.totalorder %s1948_s26, %s1944_s25  ;;  %p78_p3 = scmp.eq.s32.totalorder %s77_s28, 0 }
  0x4d   : > { %2779 = sst [smem:[#allocation31_spill]] %s2778_s17  ;;  %s193_s30 = sor.u32 %s103_s2, %s77_s28 }
  0x4e   : > { %s2780_s7 = sadd.s32 1, %s1960_s29  ;;  %p194_p1 = scmp.eq.s32.totalorder %s193_s30, 0 }
  0x4f   : > { %s2236_s10 = scalar_select %p104_p0, %s1960_s29, %s2780_s7  }
  0x50   : > { %s2239_s27 = scalar_select %p78_p3, %s1972_s9, %s80_s11  }
  0x51   : > { %2781 = sst [smem:[#allocation32_spill]] %s2236_s10  ;;  %p2783_p4 = scmp.eq.s32.totalorder %s2120_s15, 3 }
  0x52   : > { %2782 = sst [smem:[#allocation33_spill]] %s2239_s27  ;;  %p212_p9 = scmp.ne.s32.totalorder %s1944_s25, %s1940_s24 }
  0x53   : > { %p2243_p12 = por %p2783_p4, %p206_p2  ;;  %s288_s5 = sand.u32 1, %s1972_s9  }
  0x54   : > { %s2251_s20 = scalar_select %p194_p1, %s1948_s26, %s196_s12  }
  0x55   : > { %s2784_s17 = scalar_select %p2243_p12, 1, 0 }
  0x56   : > { %2785 = sst [smem:[#allocation34_spill]] %s2251_s20  ;;  %p2255_p8 = por %p2138_p6, %p212_p9 }
  0x57   : > { %s1383_s2 = sshll.u32 %s288_s5, 5  ;;  %s1430_s28 = sshll.u32 %s71_s16, 9 }
  0x58   : > { %s2786_s22 = scalar_select %p2255_p8, 1, 0 }
  0x59   : > { %s2787_s1 = sld [smem:[#allocation36_spill]]  ;;  %s292_s0 = scalar_lea.vmem [#allocation3], %s1383_s2 }
  0x5a   : > { %s304_s27 = sshll.u32 %s292_s0, 4  ;;  %p2788_p0 = scmp.lt.s32.totalorder %s1992_s14, 4  ;;  %s2272_s27 = int_to_ptr.vmem [resolvable:$true] %s304_s27 }
  0x5b   : > { %s1432_s19 = sshll.u32 %s1988_s13, 9  ;;  %s2790_s4 = sld [smem:[#allocation39_spill]] }
  0x5c   : > { %p2268_p2 = pnand %p2788_p0, %p2213_p5 }
  0x5e   : > { %p1734_p9 = pneg %p2268_p2 }
  0x5f   : > { %s2262_s30 = scalar_lea.hbm %s2787_s1, %s1430_s28  ;;  %s289_s28 = scalar_lea.sflag [#allocation4], %s288_s5 }
  0x60   : > { %s1732_s11 = scalar_lea.hbm %s2262_s30, 512  ;;  %s1737_s2 = scalar_lea.hbm %s2787_s1, 1024 }
  0x61   : > { %s2278_s7 = scalar_lea.hbm %s2790_s4, %s1432_s19  ;;  %p1733_p6 = scmp.ne.s32.totalorder %s2262_s30, %s1732_s11 }
  0x62   : > { %p1739_p5 = scmp.lt.s32.totalorder %s1737_s2, %s1732_s11 }
  0x63   : > { %p1735_p3 = pnand %p1734_p9, %p1733_p6 }
  0x65   : > { %p1736_p1 = pneg %p1735_p3 }
  0x67   : > { %p1741_p4 = pnand %p1739_p5, %p1736_p1 }
  0x69   : > { %1744 = shalt.err (!%p1741_p4)
}
  0x6a   : > { %s1745_s9 = scalar_lea.vmem %s2272_s27, 512  ;;  %s1997_s5 = smov [#allocation3]  }
  0x6b   : > { %p1746_p0 = scmp.ne.s32.totalorder %s2272_s27, %s1745_s9  ;;  %s1750_s19 = sshll.u32 %s1997_s5, 4  ;;  %s1751_s19 = int_to_ptr.vmem [resolvable:$false] %s1750_s19 }
  0x6c   : > { %s1752_s16 = scalar_lea.vmem %s1751_s19, 1024  ;;  %p1753_p6 = scmp.lt.s32.totalorder %s2272_s27, %s1751_s19 }
  0x6d   : > { %p1748_p8 = pnand %p1746_p0, %p1734_p9  ;;  %p1754_p3 = scmp.lt.s32.totalorder %s1752_s16, %s1745_s9 }
  0x6f   : > { %p1749_p12 = pneg %p1748_p8  ;;  %p1755_p7 = por %p1754_p3, %p1753_p6 }
  0x71   : > { %p1756_p13 = pnand %p1755_p7, %p1749_p12 }
  0x73   : > { %1759 = shalt.err (!%p1756_p13)
}
  0x74   : > { %s2791_s11 = smov 8   ;;  %s2792_s0 = smov 128  }
  0x75   : > { %1528 = dma.hbm_to_vmem [thread:$0]  (!%p2268_p2), %s2262_s30, 512, %s2272_s27, %s289_s28, %s2792_s0, %s2792_s0, %s2791_s11  }
  0x76   : > { %s1773_s6 = scalar_lea.vmem %s353_s18, 512  ;;  %p2793_p9 = pneg %p2171_p11 }
  0x77   : > { %p1774_p8 = scmp.ne.s32.totalorder %s353_s18, %s1773_s6  ;;  %s1998_s2 = smov [#allocation8]  }
  0x78   : > { %s1778_s9 = sshll.u32 %s1998_s2, 4  ;;  %s1779_s9 = int_to_ptr.vmem [resolvable:$false] %s1778_s9 }
  0x79   : > { %p1776_p1 = pnand %p1774_p8, %p2793_p9  ;;  %s1780_s5 = scalar_lea.vmem %s1779_s9, 1024 }
  0x7a   : > { %p1781_p7 = scmp.lt.s32.totalorder %s353_s18, %s1779_s9  ;;  %p1782_p12 = scmp.lt.s32.totalorder %s1780_s5, %s1773_s6 }
  0x7b   : > { %p1777_p5 = pneg %p1776_p1 }
  0x7c   : > { %p1783_p13 = por %p1782_p12, %p1781_p7 }
  0x7e   : > { %p1784_p4 = pnand %p1783_p13, %p1777_p5 }
  0x80   : > { %1787 = shalt.err (!%p1784_p4)
}
  0x81   : > { %1534 = dma.hbm_to_vmem [thread:$0]  (!%p2171_p11), %s2278_s7, 512, %s353_s18, %s2175_s3, %s2792_s0, %s2792_s0, %s2791_s11  }
  0x82   : > { %364 = sbr.rel (%p2192_p10) target bundleno = 3014 (0xbc6), region = 40  ;;  %s2794_s27 = sld [smem:[#allocation31_spill]] (!%p2192_p10) }
  0x83   : > { %s366_s30 = sand.u32 (!%p2192_p10), 1, %s1968_s8  }
  0x84   : > { %s1393_s12 = sshll.u32 (!%p2192_p10), %s366_s30, 5  ;;  %s367_s28 = scalar_lea.sflag (!%p2192_p10), [#allocation4], %s366_s30 }
  0x85   : > { %s2311_s19 = scalar_lea.vmem (!%p2192_p10), [#allocation3], %s1393_s12 }
  0x88   : > { %p2795_p2 = scmp.ne.s32.totalorder %s2794_s27, 0 }
  0x8a   : > { %1923 = dma.done.wait (%p2795_p2), %s367_s28, 512  }
  0x8b   : > { %1925 = vsyncadd (%p2795_p2), %s367_s28, 4294966784  ;;  %s2796_s21 = sld [smem:[#allocation18_spill]]  ;;  %s2738_s3 = sand.u32 1, %s2120_s15  }
  0x8c   : > { %s2797_s16 = sld [smem:[#allocation26_spill]]  ;;  %s376_s7 = scalar_lea.sflag [#allocation7], %s2738_s3 }
  0x91   : > { %s377_s18 = sand.u32 1, %s2796_s21  }
  0x92   : > { %s1394_s23 = sshll.u32 %s377_s18, 4  ;;  %p2798_p11 = scmp.ne.s32.totalorder %s2797_s16, 0 }
  0x93   : > { %s379_s11 = scalar_lea.vmem [#allocation6], %s1394_s23 }
  0x94   : > { %1927 = dma.done.wait (%p2798_p11), %s376_s7, 768  }
  0x95   : > { %1929 = vsyncadd (%p2798_p11), %s376_s7, 4294966528  ;;  %s2799_s0 = sld [smem:[#allocation23_spill]]  ;;  %s1395_s6 = sshll.u32 %s377_s18, 5 }
  0x96   : > { %s2739_s2 = sand.u32 1, %s1944_s25   ;;  %s1397_s5 = sshll.u32 %s377_s18, 3 }
  0x97   : > { %s1396_s9 = sshll.u32 %s2739_s2, 5  ;;  %s2800_s12 = sld [smem:[#allocation38_spill]] }
  0x98   : > { %s2336_s21 = scalar_lea.vmem [#allocation8], %s1395_s6  ;;  %s2338_s16 = scalar_lea.vmem [#allocation9], %s1396_s9 }
  0x99   : > { %s2340_s23 = scalar_lea.vmem [#allocation10], %s1397_s5  ;;  %s2342_s7 = scalar_lea.vmem [#allocation12], %s1397_s5 }
  0x9a   : > { %s2801_s3 = sld [smem:[#allocation22_spill]] }
  0x9b   : > { %p448_p10 = scmp.lt.s32.totalorder %s2799_s0, 1 }
  0x9d   : > { %s2845_s0 = smov (!%p448_p10, %s2799_s0), 1 }
  0x9e   : > { %s450_s28 = scalar_lea.vmem %s2800_s12, %s2845_s0 }
  0xa0   : > { %p1399_p0 = scmp.ne.s32.totalorder %s2801_s3, 0 }
  0xa2   : > { %460 = sbr.rel (%p1399_p0) target bundleno = 169 (0xa9), region = 56 }
  0xa7   : > { %vm461_vm0 = vcmask 261120   ;;  %v1999_v0 = vmov 0.0  }
  0xa8   : > { %462 = vst.msk [vmem:[%s2340_s23] sm:$0xff] %vm461_vm0, %v1999_v0  ;;  %463 = vst.msk [vmem:[%s2342_s7] sm:$0xff] %vm461_vm0, %v1999_v0 }
  0xa9 PF: > { %v469_v1 = vld [vmem:[%s379_s11 + $0x8] sm:$0xff]  ;;  %v468_v2 = vld [vmem:[%s379_s11] sm:$0xff]  ;;  %vm477_vm1 = vcmask 130048   ;;  %v2000_v5 = vmov 0.0   ;;  %vm2001_vm2 = vmmov 0   ;;  %vm597_vm3 = vcmask 261120  }
  0xaa   : > { %v464_v3 = vld [vmem:[%s2311_s19] sm:$0xff]  ;;  %1459 = vmatprep.subr.mxu0 %v469_v1  ;;  %v465_v4 = vld [vmem:[%s2311_s19 + $0x8] sm:$0xff]  ;;  %1469 = vmatprep.subr.mxu1 %v2000_v5  ;;  %v2352_v6 = vld [vmem:[%s2336_s21 + $0x18] sm:$0xff]  ;;  %s2803_s11 = sld [smem:[#allocation23_spill]]  ;;  %v2002_v26 = vmov 0   ;;  %s2003_s5 = smov 32  }
  0xab   : > { %1463 = vmatprep.mubr.msk.f32.mxu0 %vm477_vm1, %v464_v3  ;;  %1460 = vmatpush3.msra.mxu0 %v469_v1  ;;  %v2355_v7 = vld [vmem:[%s2336_s21 + $0x10] sm:$0xff]  ;;  %v2361_v9 = vld [vmem:[%s2336_s21 + $0x8] sm:$0xff]  ;;  %v467_v10 = vld [vmem:[%s2311_s19 + $0x18] sm:$0xff]  ;;  %s2804_s0 = sld [smem:[#allocation22_spill]] }
  0xac   : > { %1461 = vmatprep.subr.mxu0 %v468_v2  ;;  %v466_v8 = vld [vmem:[%s2311_s19 + $0x10] sm:$0xff]  ;;  %1470 = vmatpush3.msra.mxu1 %v2352_v6  ;;  %v2369_v11 = vld [vmem:[%s2336_s21] sm:$0xff]  ;;  %s2810_s8 = sld [smem:[#allocation27_spill]] }
  0xad   : > { %1462 = vmatpush3.msra.mxu0 %v468_v2  ;;  %1471 = vmatprep.subr.mxu1 %v2000_v5  ;;  %v1400_v13 = vld [vmem:[%s450_s28] ss:$0 sm:$0xff]  ;;  %s2811_s20 = sld [smem:[#allocation41_spill]] }
  0xae   : > { %1464 = vmatmul.mubr.msk.f32.vlgmr.msra.gmra.mxu0 %vm477_vm1, %v465_v4  ;;  %1472 = vmatpush3.msra.mxu1 %v2355_v7 }
  0xaf   : > { %1466 = vmatprep.mubr.msk.f32.mxu0 %vm477_vm1, %v466_v8  ;;  %1473 = vmatprep.subr.mxu1 %v2000_v5  ;;  %v2375_v12 = vld [vmem:[%s2340_s23] sm:$0xff]  ;;  %v591_v28 = vld [vmem:[%s2342_s7] sm:$0xff] }
  0xb0   : > { %1474 = vmatpush3.msra.mxu1 %v2361_v9  ;;  %1477 = vmatprep.mubr.msk.f32.mxu1 %vm2001_vm2, %v2000_v5  ;;  %s2740_s6 = smul.u32 24, %s2803_s11  ;;  %s2418_s30 = ssub.s32 1, %s2803_s11 }
  0xb1   : > { %1475 = vmatprep.subr.mxu1 %v2000_v5  ;;  %1480 = vmatprep.subr.mxu0 %v2000_v5  ;;  %s586_s27 = ssub.s32 1, %s2804_s0  ;;  %s585_s12 = smul.u32 %s2804_s0, %s2418_s30 }
  0xb2   : > { %1467 = vmatmul.mubr.msk.f32.gmra.mxu0 %vm477_vm1, %v467_v10  ;;  %1476 = vmatpush3.msra.mxu1 %v2369_v11  ;;  %s595_s9 = scalar_lea.vmem [#allocation2], %s2740_s6  ;;  %s587_s28 = smul.u32 %s2803_s11, %s586_s27 }
  0xb3   : > { %1478 = vmatmul.mubr.msk.f32.vlgmr.msra.gmra.mxu1 %vm597_vm3, %v2375_v12  ;;  %1481 = vmatpush3.msra.mxu0 %v2352_v6  ;;  %s592_s19 = smul.u32 3, %s2803_s11  ;;  %s2805_s6 = sld [smem:[#allocation35_spill]] }
  0xb4   : > { %1482 = vmatprep.subr.mxu0 %v2000_v5  ;;  %1488 = vmatprep.mubr.msk.f32.mxu0 %vm2001_vm2, %v2000_v5  ;;  %s588_s21 = sadd.s32 %s587_s28, %s585_s12  ;;  %s2004_s0 = smov 64  }
  0xb5   : > { %1483 = vmatpush3.msra.mxu0 %v2355_v7  ;;  %1491 = vmatprep.subr.mxu1 %v2000_v5  ;;  %s2424_s3 = sshll.u32 %s588_s21, 2  ;;  %s1409_s2 = sshll.u32 %s2803_s11, 1 }
  0xb6   : > { %1484 = vmatprep.subr.mxu0 %v2000_v5  ;;  %1492 = vmatpush3.msra.mxu1 %v2352_v6  ;;  %s593_s18 = sadd.s32 %s2424_s3, %s592_s19  ;;  %s1413_s21 = sshll.u32 %s2418_s30, 1 }
  0xb7   : > { %1485 = vmatpush3.msra.mxu0 %v2361_v9  ;;  %1493 = vmatprep.subr.mxu1 %v2000_v5  ;;  %v700_v33 = vstv %s593_s18  ;;  %s2485_s19 = sadd.s32 %s2803_s11, %s1413_s21  ;;  %s964_s21 = smul.u32 3, %s2418_s30 }
  0xb8   : > { %1486 = vmatprep.subr.mxu0 %v2000_v5  ;;  %1494 = vmatpush3.msra.mxu1 %v2355_v7  ;;  %s1414_s18 = sshll.u32 %s2485_s19, 3  ;;  %s2809_s13 = smul.u32 24, %s2418_s30 }
  0xb9   : > { %1487 = vmatpush3.msra.mxu0 %v2369_v11  ;;  %1495 = vmatprep.subr.mxu1 %v2000_v5  ;;  %v2430_v32 = vld [vmem:[%s2805_s6] sm:$0xff]  ;;  %s2459_s6 = sadd.s32 %s1409_s2, %s2418_s30  ;;  %s844_s2 = sadd.s32 %s2424_s3, %s2485_s19 }
  0xba   : > { %1496 = vmatpush3.msra.mxu1 %v2361_v9  ;;  %1499 = vmatprep.mubr.msk.f32.mxu1 %vm2001_vm2, %v2000_v5  ;;  %vm701_vm4 = vcmp.gt.s32.totalorder %v2430_v32, %v700_v33  ;;  %s1410_s27 = sshll.u32 %s2459_s6, 3  ;;  %s722_s28 = sadd.s32 %s2424_s3, %s2459_s6 }
  0xbb   : > { %1497 = vmatprep.subr.mxu1 %v2000_v5  ;;  %1502 = vmatprep.subr.mxu0 %v2000_v5  ;;  %v702_v37 = vsel %vm701_vm4, 1, %v2002_v26  ;;  %s724_s12 = scalar_lea.vmem [#allocation2], %s1410_s27  ;;  %v826_v53 = vstv %s722_s28  ;;  %s1424_s6 = sshll.u32 %s2803_s11, 3 }
  0xbc   : > { %1498 = vmatpush3.msra.mxu1 %v2369_v11  ;;  %1670 = vset.pattern.permute.xlu1 %v2002_v26  ;;  %vm827_vm6 = vcmp.gt.s32.totalorder %v2430_v32, %v826_v53  ;;  %s1082_s10 = scalar_lea.vmem %s2338_s16, %s2809_s13 [#allocation9]  ;;  %p2815_p3 = scmp.ne.s32.totalorder %s2810_s8, 0 }
  0xbd   : > { %1671 = vset.pattern.permute.xlu0 %v2002_v26  ;;  %v828_v55 = vsel %vm827_vm6, 1, %v2002_v26 }
 0x16e   : > { %v1465_v14 = vpop.f32.mrf.mxu0 }
 0x16f   : > { %v562_v15 = vadd.f32 %v1465_v14, %v1400_v13 }
 0x170   : > { %v556_v16 = vpop.f32.mrf.mxu0 }
 0x171   : > { %576 = vst [vmem:[#allocation2 + $0x8] sm:$0xff] %v562_v15  ;;  %v557_v17 = vadd.f32 %v1400_v13, %v556_v16 }
 0x172   : > { %v1468_v18 = vpop.f32.mrf.mxu0 }
 0x173   : > { %575 = vst [vmem:[#allocation2] sm:$0xff] %v557_v17  ;;  %v572_v19 = vadd.f32 %v1468_v18, %v1400_v13  ;;  %v667_v20 = vpop.f32.mrf.mxu1 }
 0x174   : > { %v566_v21 = vpop.f32.mrf.mxu0 }
 0x175   : > { %578 = vst [vmem:[#allocation2 + $0x18] sm:$0xff] %v572_v19  ;;  %v567_v22 = vadd.f32 %v1400_v13, %v566_v21  ;;  %v1479_v23 = vpop.f32.mrf.mxu1 }
 0x177   : > { %577 = vst [vmem:[#allocation2 + $0x10] sm:$0xff] %v567_v22 }
 0x17e   : > { %v596_v24 = vld [vmem:[%s595_s9] sm:$0xff]  ;;  %s846_s9 = scalar_lea.vmem [#allocation2], %s1414_s18 }
 0x17f   : > { %v671_v25 = vadd.f32 %v667_v20, %v596_v24  ;;  %v725_v49 = vld [vmem:[%s724_s12] sm:$0xff]  ;;  %s2741_s12 = smul.u32 24, %s2418_s30  ;;  %s2812_s30 = sld [smem:[#allocation42_spill]] }
 0x180   : > { %v847_v8 = vld [vmem:[%s846_s9] sm:$0xff]  ;;  %s965_s9 = sadd.s32 %s2424_s3, %s964_s21  ;;  %s838_s21 = scalar_lea.vmem %s2338_s16, %s1410_s27 [#allocation9] }
 0x181   : > { %1672 = vtanh.f32 %v671_v25  ;;  %v1407_v29 = vmul.f32 -1.442695, %v671_v25  ;;  %s967_s28 = scalar_lea.vmem [#allocation2], %s2741_s12  ;;  %s1124_s27 = sadd.s32 %s1424_s6, %s2424_s3 }
 0x182   : > { %v968_v33 = vld [vmem:[%s967_s28] sm:$0xff]  ;;  %s1425_s19 = sshll.u32 %s1124_s27, 7  ;;  %s2807_s12 = sld [smem:[#allocation40_spill]] }
 0x183   : > { %1674 = vpow2.f32 %v1407_v29  ;;  %s2006_s27 = smov [#allocation10]  }
 0x185   : > { %s2813_s3 = smov %s2812_s30 }
 0x188   : > { %s2808_s1 = smov %s2807_s12  ;;  %s2543_s4 = scalar_lea.hbm %s2807_s12, %s1425_s19 }
 0x189   : > { %s2814_s12 = sand.u32 1, %s2120_s15   ;;  %s1792_s19 = sshll.u32 %s2006_s27, 4  ;;  %s1793_s19 = int_to_ptr.vmem [resolvable:$false] %s1792_s19 }
 0x18e   : > { %v1673_v27 = vpop.eup %1672 }
 0x18f   : > { %685 = vrot.lane.b32.xlu0 %v1673_v27, %s2003_s5 }
 0x190   : > { %v1675_v30 = vpop.eup %1674 }
 0x191   : > { %v675_v31 = vadd.f32 1.0, %v1675_v30 }
 0x193   : > { %680 = vrot.lane.b32.xlu0 %v591_v28, %s2003_s5  ;;  %1676 = vrcp.f32 %v675_v31 }
 0x1a0   : > { %v1677_v34 = vpop.eup %1676 }
 0x201   : > { %v686_v35 = vpop.permute.xlu0 %685 }
 0x202   : > { %v688_v36 = vmul.f32 %v1677_v34, %v686_v35 }
 0x204   : > { %690 = vrot.lane.b32.xlu1 %v688_v36, %s2003_s5 }
 0x205   : > { %v681_v38 = vpop.permute.xlu0 %680 }
 0x206   : > { %v683_v39 = vmul.f32 %v1677_v34, %v681_v38 }
 0x208   : > { %704 = vperm.xlu1 %1670, %v702_v37   ;;  %v1069_v37 = vstv %s965_s9  ;;  %s960_s9 = scalar_lea.vmem %s2338_s16, %s1414_s18 [#allocation9]  ;;  %s1426_s18 = sshll.u32 %s2803_s11, 7 }
 0x209   : > { %vm1070_vm10 = vcmp.gt.s32.totalorder %v2430_v32, %v1069_v37  ;;  %s2553_s26 = scalar_lea.hbm %s2811_s20, %s1426_s18  ;;  %s2566_s29 = scalar_lea.hbm %s2812_s30, %s1426_s18 }
 0x20c   : > { %715 = vrot.lane.b32.xlu1 %v2375_v12, %s2004_s0  ;;  %v948_v12 = vstv %s844_s2  ;;  %s2806_s2 = smul.u32 24, %s2803_s11  ;;  %s1156_s11 = sshll.u32 %s2342_s7, 4  ;;  %s2568_s11 = int_to_ptr.vmem [resolvable:$true] %s1156_s11 }
 0x20d   : > { %vm949_vm8 = vcmp.gt.s32.totalorder %v2430_v32, %v948_v12 }
 0x20e   : > { %v950_v14 = vsel %vm949_vm8, 1, %v2002_v26  ;;  %s713_s28 = scalar_lea.vmem %s2338_s16, %s2806_s2 [#allocation9] }
 0x276   : > { %v691_v40 = vpop.permute.xlu1 %690 }
 0x277   : > { %v693_v41 = vadd.f32 %v691_v40, %v683_v39  ;;  %v1071_v39 = vsel %vm1070_vm10, 1, %v2002_v26 }
 0x279   : > { %1678 = vtanh.f32 %v693_v41 }
 0x283   : > { %v2438_v43 = vpop.permute.xlu1 %704 }
 0x284   : > { %vm706_vm5 = vcmp.eq.s32.totalorder %v2438_v43, 1 }
 0x285   : > { %v719_v62 = vsel %vm706_vm5, %v693_v41, %v681_v38 }
 0x286   : > { %v1679_v42 = vpop.eup %1678 }
 0x287   : > { %696 = vrot.lane.b32.xlu0 %v1679_v42, %s2003_s5  ;;  %v716_v45 = vpop.permute.xlu1 %715 }
 0x2f9   : > { %v697_v44 = vpop.permute.xlu0 %696 }
 0x2fa   : > { %v2440_v46 = vmul.f32 %v1677_v34, %v697_v44 }
 0x2fc   : > { %v718_v47 = vsel %vm706_vm5, %v2440_v46, %v716_v45  ;;  %v707_v40 = vsel %vm706_vm5, %v2440_v46, 0.0 }
 0x2fd   : > { %727 = vrot.lane.b32.xlu0 %v718_v47, %s2004_s0 }
 0x36f   : > { %v728_v48 = vpop.permute.xlu0 %727 }
 0x370   : > { %1489 = vmatmul.mubr.msk.f32.vlgmr.msra.gmra.mxu0 %vm597_vm3, %v728_v48 }
 0x371   : > { %1503 = vmatpush3.msra.mxu0 %v2352_v6  ;;  %1510 = vmatprep.mubr.msk.f32.mxu0 %vm2001_vm2, %v2000_v5 }
 0x372   : > { %1504 = vmatprep.subr.mxu0 %v2000_v5 }
 0x373   : > { %1505 = vmatpush3.msra.mxu0 %v2355_v7 }
 0x374   : > { %1506 = vmatprep.subr.mxu0 %v2000_v5 }
 0x375   : > { %1507 = vmatpush3.msra.mxu0 %v2361_v9 }
 0x376   : > { %1508 = vmatprep.subr.mxu0 %v2000_v5 }
 0x377   : > { %1509 = vmatpush3.msra.mxu0 %v2369_v11 }
 0x430   : > { %v797_v50 = vpop.f32.mrf.mxu0 }
 0x431   : > { %v801_v51 = vadd.f32 %v797_v50, %v725_v49 }
 0x432   : > { %v1490_v52 = vpop.f32.mrf.mxu0 }
 0x433   : > { %1680 = vtanh.f32 %v801_v51  ;;  %v1412_v56 = vmul.f32 -1.442695, %v801_v51 }
 0x435   : > { %1682 = vpow2.f32 %v1412_v56 }
 0x440   : > { %v1681_v54 = vpop.eup %1680 }
 0x441   : > { %811 = vrot.lane.b32.xlu1 %v1681_v54, %s2003_s5 }
 0x442   : > { %v1683_v57 = vpop.eup %1682 }
 0x443   : > { %v805_v58 = vadd.f32 1.0, %v1683_v57 }
 0x445   : > { %830 = vperm.xlu1 %1670, %v828_v55   ;;  %1684 = vrcp.f32 %v805_v58 }
 0x452   : > { %v1685_v59 = vpop.eup %1684 }
 0x453   : > { %v809_v63 = vmul.f32 %v1685_v59, %v719_v62 }
 0x4b3   : > { %v812_v60 = vpop.permute.xlu1 %811 }
 0x4b4   : > { %v814_v61 = vmul.f32 %v1685_v59, %v812_v60 }
 0x4b6   : > { %816 = vrot.lane.b32.xlu0 %v814_v61, %s2003_s5 }
 0x4c0   : > { %v2473_v3 = vpop.permute.xlu1 %830 }
 0x4c1   : > { %vm832_vm7 = vcmp.eq.s32.totalorder %v2473_v3, 1 }
 0x528   : > { %v817_v0 = vpop.permute.xlu0 %816 }
 0x529   : > { %v819_v1 = vadd.f32 %v817_v0, %v809_v63 }
 0x52b   : > { %1686 = vtanh.f32 %v819_v1  ;;  %v841_v21 = vsel %vm832_vm7, %v819_v1, %v719_v62 }
 0x538   : > { %v1687_v2 = vpop.eup %1686 }
 0x539   : > { %822 = vrot.lane.b32.xlu0 %v1687_v2, %s2003_s5 }
 0x5ab   : > { %v823_v4 = vpop.permute.xlu0 %822 }
 0x5ac   : > { %v2475_v5 = vmul.f32 %v1685_v59, %v823_v4 }
 0x5ae   : > { %v840_v6 = vsel %vm832_vm7, %v2475_v5, %v718_v47  ;;  %v833_v54 = vsel %vm832_vm7, %v2475_v5, 0.0 }
 0x5af   : > { %849 = vrot.lane.b32.xlu1 %v840_v6, %s2004_s0 }
 0x621   : > { %v850_v7 = vpop.permute.xlu1 %849 }
 0x622   : > { %1500 = vmatmul.mubr.msk.f32.vlgmr.msra.gmra.mxu1 %vm597_vm3, %v850_v7 }
 0x6e2   : > { %v919_v9 = vpop.f32.mrf.mxu1 }
 0x6e3   : > { %v923_v10 = vadd.f32 %v919_v9, %v847_v8 }
 0x6e4   : > { %v1501_v11 = vpop.f32.mrf.mxu1 }
 0x6e5   : > { %1688 = vtanh.f32 %v923_v10  ;;  %v1416_v15 = vmul.f32 -1.442695, %v923_v10 }
 0x6e7   : > { %1690 = vpow2.f32 %v1416_v15 }
 0x6f2   : > { %v1689_v13 = vpop.eup %1688 }
 0x6f3   : > { %933 = vrot.lane.b32.xlu0 %v1689_v13, %s2003_s5 }
 0x6f4   : > { %v1691_v16 = vpop.eup %1690 }
 0x6f5   : > { %v927_v17 = vadd.f32 1.0, %v1691_v16 }
 0x6f7   : > { %952 = vperm.xlu0 %1671, %v950_v14   ;;  %1692 = vrcp.f32 %v927_v17 }
 0x704   : > { %v1693_v18 = vpop.eup %1692 }
 0x705   : > { %v931_v22 = vmul.f32 %v1693_v18, %v841_v21 }
 0x765   : > { %v934_v19 = vpop.permute.xlu0 %933 }
 0x766   : > { %v936_v20 = vmul.f32 %v1693_v18, %v934_v19 }
 0x768   : > { %938 = vrot.lane.b32.xlu1 %v936_v20, %s2003_s5 }
 0x772   : > { %v953_v27 = vpop.permute.xlu0 %952 }
 0x773   : > { %vm954_vm9 = vcmp.eq.s32.totalorder %v953_v27, 1 }
 0x7da   : > { %v939_v23 = vpop.permute.xlu1 %938 }
 0x7db   : > { %v941_v24 = vadd.f32 %v939_v23, %v931_v22 }
 0x7dd   : > { %1694 = vtanh.f32 %v941_v24  ;;  %v963_v46 = vsel %vm954_vm9, %v941_v24, %v841_v21 }
 0x7ea   : > { %v1695_v25 = vpop.eup %1694 }
 0x7eb   : > { %944 = vrot.lane.b32.xlu1 %v1695_v25, %s2003_s5 }
 0x85d   : > { %v945_v28 = vpop.permute.xlu1 %944 }
 0x85e   : > { %v947_v29 = vmul.f32 %v1693_v18, %v945_v28 }
 0x860   : > { %v962_v30 = vsel %vm954_vm9, %v947_v29, %v840_v6  ;;  %v955_v41 = vsel %vm954_vm9, %v947_v29, 0.0 }
 0x861   : > { %970 = vrot.lane.b32.xlu1 %v962_v30, %s2004_s0 }
 0x8d3   : > { %v971_v31 = vpop.permute.xlu1 %970 }
 0x8d4   : > { %1511 = vmatmul.mubr.msk.f32.vlgmr.msra.gmra.mxu0 %vm597_vm3, %v971_v31 }
 0x994   : > { %v1040_v34 = vpop.f32.mrf.mxu0 }
 0x995   : > { %v1044_v35 = vadd.f32 %v1040_v34, %v968_v33 }
 0x996   : > { %v1512_v36 = vpop.f32.mrf.mxu0 }
 0x997   : > { %1696 = vtanh.f32 %v1044_v35  ;;  %v1418_v42 = vmul.f32 -1.442695, %v1044_v35 }
 0x999   : > { %1698 = vpow2.f32 %v1418_v42 }
 0x9a4   : > { %v1697_v38 = vpop.eup %1696 }
 0x9a5   : > { %1054 = vrot.lane.b32.xlu0 %v1697_v38, %s2003_s5 }
 0x9a6   : > { %v1699_v32 = vpop.eup %1698 }
 0x9a7   : > { %v1048_v44 = vadd.f32 1.0, %v1699_v32 }
 0x9a9   : > { %1073 = vperm.xlu0 %1671, %v1071_v39   ;;  %1700 = vrcp.f32 %v1048_v44 }
 0x9ad   : > { %709 = vrot.lane.b32.xlu0 %v707_v40, %s2004_s0 }
 0x9b1   : > { %957 = vrot.lane.b32.xlu0 %v955_v41, %s2004_s0 }
 0x9b6   : > { %v1701_v45 = vpop.eup %1700 }
 0x9b7   : > { %v1052_v49 = vmul.f32 %v1701_v45, %v963_v46 }
 0xa17   : > { %v1055_v26 = vpop.permute.xlu0 %1054 }
 0xa18   : > { %v1057_v47 = vmul.f32 %v1701_v45, %v1055_v26 }
 0xa1a   : > { %1059 = vrot.lane.b32.xlu1 %v1057_v47, %s2003_s5 }
 0xa24   : > { %v1074_v48 = vpop.permute.xlu0 %1073 }
 0xa25   : > { %vm1075_vm11 = vcmp.eq.s32.totalorder %v1074_v48, 1 }
 0xa28   : > { %v710_v43 = vpop.permute.xlu0 %709 }
 0xa29   : > { %714 = vst.msk [vmem:[%s713_s28] sm:$0xff] %vm597_vm3, %v710_v43 }
 0xa2c   : > { %v958_v60 = vpop.permute.xlu0 %957 }
 0xa8c   : > { %v1060_v50 = vpop.permute.xlu1 %1059 }
 0xa8d   : > { %v1062_v51 = vadd.f32 %v1060_v50, %v1052_v49 }
 0xa8f   : > { %1702 = vtanh.f32 %v1062_v51  ;;  %v1085_v52 = vsel %vm1075_vm11, %v1062_v51, %v963_v46 }
 0xa9c   : > { %v1703_v53 = vpop.eup %1702 }
 0xa9d   : > { %1065 = vrot.lane.b32.xlu1 %v1703_v53, %s2003_s5  ;;  %s2005_s5 = smov 96  }
 0xaa1   : > { %835 = vrot.lane.b32.xlu1 %v833_v54, %s2004_s0 }
 0xb0f   : > { %v1066_v55 = vpop.permute.xlu1 %1065 }
 0xb10   : > { %v1068_v56 = vmul.f32 %v1701_v45, %v1066_v55 }
 0xb12   : > { %v1084_v57 = vsel %vm1075_vm11, %v1068_v56, %v962_v30  ;;  %v1076_v58 = vsel %vm1075_vm11, %v1068_v56, 0.0 }
 0xb13   : > { %1087 = vrot.lane.b32.xlu1 %v1084_v57, %s2004_s0  ;;  %v836_v59 = vpop.permute.xlu1 %835  ;;  %1078 = vrot.lane.b32.xlu0 %v1076_v58, %s2004_s0  ;;  %s1143_s0 = sshll.u32 %s2340_s23, 4  ;;  %s2555_s0 = int_to_ptr.vmem [resolvable:$true] %s1143_s0 }
 0xb14   : > { %839 = vst.msk [vmem:[%s838_s21] sm:$0xff] %vm597_vm3, %v836_v59  ;;  %s1127_s21 = sshll.u32 %s2338_s16, 4  ;;  %s1788_s6 = scalar_lea.vmem %s2555_s0, 128  ;;  %s2558_s21 = int_to_ptr.vmem [resolvable:$true] %s1127_s21 }
 0xb15   : > { %961 = vst.msk [vmem:[%s960_s9] sm:$0xff] %vm597_vm3, %v958_v60  ;;  %p1789_p6 = scmp.ne.s32.totalorder %s2555_s0, %s1788_s6  ;;  %p1795_p1 = scmp.lt.s32.totalorder %s2555_s0, %s1793_s19 }
 0xb17   : > { %1092 = vrot.lane.b32.xlu1 %v1085_v52, %s2005_s5  ;;  %s2572_s5 = scalar_lea.sflag [#allocation11], %s2814_s12  ;;  %p1790_p8 = pnand %p1789_p6, %p2815_p3 }
 0xb19   : > { %p1791_p9 = pneg %p1790_p8 }
 0xb85   : > { %v1088_v61 = vpop.permute.xlu1 %1087  ;;  %v1079_v62 = vpop.permute.xlu0 %1078 }
 0xb86   : > { %1090 = vst.msk [vmem:[%s2340_s23] sm:$0xff] %vm597_vm3, %v1088_v61  ;;  %1083 = vst.msk [vmem:[%s1082_s10] sm:$0xff] %vm597_vm3, %v1079_v62  ;;  %s1794_s23 = scalar_lea.vmem %s1793_s19, 256 }
 0xb87   : > { %p1796_p5 = scmp.lt.s32.totalorder %s1794_s23, %s1788_s6 }
 0xb89   : > { %p1797_p7 = por %p1796_p5, %p1795_p1 }
 0xb8b   : > { %p1798_p12 = pnand %p1797_p7, %p1791_p9 }
 0xb8d   : > { %1801 = shalt.err (!%p1798_p12)
}
 0xb8e   : > { %s1802_s15 = scalar_lea.hbm %s2553_s26, 128  ;;  %s1806_s2 = scalar_lea.hbm %s2811_s20, 256 }
 0xb8f   : > { %p1803_p13 = scmp.ne.s32.totalorder %s2553_s26, %s1802_s15  ;;  %p1807_p11 = scmp.lt.s32.totalorder %s2553_s26, %s2811_s20 }
 0xb90   : > { %p1808_p10 = scmp.lt.s32.totalorder %s1806_s2, %s1802_s15 }
 0xb91   : > { %p1804_p4 = pnand %p1803_p13, %p2815_p3 }
 0xb92   : > { %p1809_p0 = por %p1808_p10, %p1807_p11 }
 0xb93   : > { %p1805_p2 = pneg %p1804_p4 }
 0xb95   : > { %p1810_p6 = pnand %p1809_p0, %p1805_p2 }
 0xb97   : > { %1813 = shalt.err (!%p1810_p6)
}
 0xb98   : > { %1520 = dma.vmem_to_hbm [thread:$0]  (%p2815_p3), %s2555_s0, 128, %s2553_s26, %s2572_s5  }
 0xb99   : > { %s2816_s13 = sand.u32 1, %s1944_s25   ;;  %s1814_s30 = scalar_lea.vmem %s2558_s21, 512 }
 0xb9a   : > { %s2597_s16 = scalar_lea.sflag [#allocation5], %s2816_s13  ;;  %p1815_p8 = scmp.ne.s32.totalorder %s2558_s21, %s1814_s30 }
 0xb9b   : > { %p2817_p9 = scmp.ne.s32.totalorder %s2784_s17, 0  ;;  %s2007_s12 = smov [#allocation9]  }
 0xb9c   : > { %s1818_s6 = sshll.u32 %s2007_s12, 4  ;;  %s1819_s6 = int_to_ptr.vmem [resolvable:$false] %s1818_s6 }
 0xb9d   : > { %p1816_p1 = pnand %p1815_p8, %p2817_p9  ;;  %s1820_s27 = scalar_lea.vmem %s1819_s6, 1024 }
 0xb9e   : > { %p1821_p7 = scmp.lt.s32.totalorder %s2558_s21, %s1819_s6  ;;  %p1822_p12 = scmp.lt.s32.totalorder %s1820_s27, %s1814_s30 }
 0xb9f   : > { %p1817_p5 = pneg %p1816_p1 }
 0xba0   : > { %p1823_p13 = por %p1822_p12, %p1821_p7 }
 0xba2   : > { %p1824_p4 = pnand %p1823_p13, %p1817_p5 }
 0xba4   : > { %1827 = shalt.err (!%p1824_p4)
}
 0xba5   : > { %s1828_s26 = scalar_lea.hbm %s2543_s4, 512  ;;  %s1832_s23 = scalar_lea.hbm %s2808_s1, 2048 }
 0xba6   : > { %p1829_p2 = scmp.ne.s32.totalorder %s2543_s4, %s1828_s26  ;;  %p1833_p0 = scmp.lt.s32.totalorder %s2543_s4, %s2808_s1 }
 0xba7   : > { %p1834_p6 = scmp.lt.s32.totalorder %s1832_s23, %s1828_s26 }
 0xba8   : > { %p1830_p11 = pnand %p1829_p2, %p2817_p9 }
 0xba9   : > { %p1835_p8 = por %p1834_p6, %p1833_p0 }
 0xbaa   : > { %p1831_p10 = pneg %p1830_p11 }
 0xbac   : > { %p1836_p1 = pnand %p1835_p8, %p1831_p10 }
 0xbae   : > { %1839 = shalt.err (!%p1836_p1)
}
 0xbaf   : > { %s2008_s18 = smov 128   ;;  %s2009_s2 = smov 8   ;;  %v1093_v63 = vpop.permute.xlu1 %1092 }
 0xbb0   : > { %1519 = dma.vmem_to_hbm [thread:$0]  (%p2817_p9), %s2558_s21, 512, %s2543_s4, %s2597_s16, %s2008_s18, %s2008_s18, %s2009_s2  }
 0xbb1   : > { %1095 = vst.msk [vmem:[%s2342_s7] sm:$0xff] %vm597_vm3, %v1093_v63  ;;  %s1840_s28 = scalar_lea.vmem %s2568_s11, 128  ;;  %s2010_s9 = smov [#allocation12]  }
 0xbb2   : > { %p1841_p5 = scmp.ne.s32.totalorder %s2568_s11, %s1840_s28  ;;  %s1844_s13 = sshll.u32 %s2010_s9, 4  ;;  %s1845_s13 = int_to_ptr.vmem [resolvable:$false] %s1844_s13 }
 0xbb3   : > { %s1846_s30 = scalar_lea.vmem %s1845_s13, 256  ;;  %p1847_p13 = scmp.lt.s32.totalorder %s2568_s11, %s1845_s13 }
 0xbb4   : > { %p1842_p7 = pnand %p1841_p5, %p2815_p3  ;;  %p1848_p4 = scmp.lt.s32.totalorder %s1846_s30, %s1840_s28 }
 0xbb6   : > { %p1843_p12 = pneg %p1842_p7  ;;  %p1849_p2 = por %p1848_p4, %p1847_p13 }
 0xbb8   : > { %p1850_p11 = pnand %p1849_p2, %p1843_p12 }
 0xbba   : > { %1853 = shalt.err (!%p1850_p11)
}
 0xbbb   : > { %s1854_s4 = scalar_lea.hbm %s2566_s29, 128  ;;  %s1858_s21 = scalar_lea.hbm %s2813_s3, 256 }
 0xbbc   : > { %p1855_p9 = scmp.ne.s32.totalorder %s2566_s29, %s1854_s4  ;;  %p1859_p6 = scmp.lt.s32.totalorder %s2566_s29, %s2813_s3 }
 0xbbd   : > { %p1860_p8 = scmp.lt.s32.totalorder %s1858_s21, %s1854_s4 }
 0xbbe   : > { %p1856_p10 = pnand %p1855_p9, %p2815_p3 }
 0xbbf   : > { %p1861_p1 = por %p1860_p8, %p1859_p6 }
 0xbc0   : > { %p1857_p0 = pneg %p1856_p10 }
 0xbc2   : > { %p1862_p5 = pnand %p1861_p1, %p1857_p0 }
 0xbc4   : > { %1865 = shalt.err (!%p1862_p5)
}
 0xbc5   : > { %1521 = dma.vmem_to_hbm [thread:$0]  (%p2815_p3), %s2568_s11, 128, %s2566_s29, %s2572_s5  }
 0xbc6 PF: > { %p1546_p7 = scmp.ge.s32.totalorder %s1992_s14, 2  ;;  %s1168_s6 = sand.u32 1, %s1940_s24  }
 0xbc7   : > { %p2818_p12 = scmp.ne.s32.totalorder %s2786_s22, 0  ;;  %s1169_s27 = scalar_lea.sflag [#allocation5], %s1168_s6 }
 0xbc9   : > { %p1536_p13 = pnand %p1546_p7, %p2818_p12 }
 0xbcb   : > { %p1537_p4 = pneg %p1536_p13 }
 0xbcd   : > { %1931 = dma.done.wait (%p1537_p4), %s1169_s27, 512  }
 0xbce   : > { %1933 = vsyncadd (%p1537_p4), %s1169_s27, 4294966784  ;;  %s2819_s26 = sadd.s32 4294967294, %s1992_s14   ;;  %s2820_s0 = sld [smem:[#allocation28_spill]] }
 0xbcf   : > { %s1177_s8 = sand.u32 1, %s2819_s26  }
 0xbd0   : > { %s1178_s11 = scalar_lea.sflag [#allocation11], %s1177_s8 }
 0xbd4   : > { %p2821_p2 = scmp.ne.s32.totalorder %s2820_s0, 0 }
 0xbd6   : > { %p1539_p11 = pnand %p1546_p7, %p2821_p2 }
 0xbd8   : > { %p1540_p9 = pneg %p1539_p11 }
 0xbda   : > { %1935 = dma.done.wait (%p1540_p9), %s1178_s11, 256  }
 0xbdb   : > { %1937 = vsyncadd (%p1540_p9), %s1178_s11, 4294967040  ;;  %s30_s14 = sadd.s32 1, %s1992_s14   ;;  %s2823_s22 = sld [smem:[#allocation17_spill]] }
 0xbdc   : > { %p2652_p3 = scmp.ge.s32.totalorder %s30_s14, 6   ;;  %s2824_s26 = sld [smem:[#allocation34_spill]] }
 0xbdd   : > { %s2825_s27 = sld [smem:[#allocation18_spill]]  ;;  %s2836_s24 = smov %s1944_s25 }
 0xbde   : > { %s2826_s28 = sld [smem:[#allocation19_spill]] }
 0xbdf   : > { %s2827_s29 = sld [smem:[#allocation32_spill]] }
 0xbe0   : > { %s2828_s30 = sld [smem:[#allocation20_spill]] }
 0xbe1   : > { %s2829_s8 = sld [smem:[#allocation21_spill]]  ;;  %s2837_s25 = smov %s2823_s22 }
 0xbe2   : > { %s2830_s9 = sld [smem:[#allocation33_spill]]  ;;  %29 = sbr.rel (!%p2652_p3) target bundleno = 23 (0x17), region = 156 }
 0xbe3   : > { %s2831_s10 = sld [smem:[#allocation24_spill]] }
 0xbe4   : > { %s2832_s11 = sld [smem:[#allocation25_spill]] }
 0xbe5   : > { %s2833_s12 = sld [smem:[#allocation29_spill]] }
 0xbe6   : > { %s2834_s13 = sld [smem:[#allocation30_spill]] }
 0xbe7   :  { %1192 = vsyncpa [#allocation4], 1 }
 0xbe8   :  { %1194 = vsyncpa [#allocation4 + $0x1], 1 }
 0xbe9   :  { %1195 = vsyncpa [#allocation7], 1 }
 0xbea   :  { %1197 = vsyncpa [#allocation7 + $0x1], 1 }
 0xbeb   :  { %1198 = vsyncpa [#allocation5], 1 }
 0xbec   :  { %1200 = vsyncpa [#allocation5 + $0x1], 1 }
 0xbed   :  { %1201 = vsyncpa [#allocation11], 1 }
 0xbee   :  { %1203 = vsyncpa [#allocation11 + $0x1], 1 }

</bundles_post_ra>
